<compile_context>
chip_gen: v7x
topology: tpu7x:2x2x1
jax: 0.10.0
libtpu: 0.0.40
codegen_flags: <defaults>
</compile_context>

<pallas_src>
import functools

import jax
import jax.numpy as jnp
from jax.experimental import pallas as pl
from jax.experimental.pallas import tpu as pltpu


_TAP_OFFSETS = ((-1, -1), (-1, 0), (-1, 1),
                (0, -1), (0, 0), (0, 1),
                (1, -1), (1, 0), (1, 1))

_CPAD = 16  # channel padding: bf16 packs 16 sublanes per vreg


def _round_up(x, m):
    return (x + m - 1) // m * m


def _fused_conv_block_kernel(x_ref, mask_ref, w1_ref, b1_ref, w2_ref, b2_ref,
                             o_ref, p1_ref, p2_ref, *, W):
    """Fused 3x3 conv -> ReLU -> 3x3 conv -> ReLU over the whole (batch-folded) image.

    x_ref   : (Cin_p, NS)      f32, NS = N*H*W flattened into lanes (lane dense)
    mask_ref: (9, NS)          f32 0/1 per-tap border-validity masks (precomputed)
    w1_ref  : (Cmid_p, 9*Cin_p)  bf16 folded conv1 weights (taps folded into K)
    b1_ref  : (Cmid_p, 1)        f32
    w2_ref  : (Cout, 9*Cmid_p)   bf16 folded conv2 weights
    b2_ref  : (Cout, 1)          f32
    o_ref   : (Cout, NS)         f32 (lane-dense output)
    p1_ref  : (9*Cin_p, NS)      bf16 VMEM scratch (stacked conv1 patches)
    p2_ref  : (9*Cmid_p, NS)     bf16 VMEM scratch (stacked conv2 patches)
    """
    NS = x_ref.shape[-1]
    cin_p = x_ref.shape[0]
    cmid_p = w1_ref.shape[0]

    def build_patches(act, c, p_ref):
        # act: (c, NS) f32. Write 9 shifted+masked tap slabs stacked along the
        # contraction (sublane) axis of p_ref -> (9*c, NS) bf16. Each spatial shift
        # is a static lane roll (XLU slot); the precomputed mask zeroes every tap
        # that would wrap a row / image / batch boundary (this *is* the zero pad).
        # Mask multiply stays f32 (v5e-safe); the store casts to bf16 (bf16 scratch).
        for t, (oy, ox) in enumerate(_TAP_OFFSETS):
            d = oy * W + ox
            shifted = act if d == 0 else pltpu.roll(act, shift=(-d) % NS, axis=1)
            p_ref[t * c:(t + 1) * c, :] = (
                shifted * mask_ref[t:t + 1, :]).astype(jnp.bfloat16)

    # ---- conv1 (3x3, pad=1) -> Identity norm -> ReLU ----
    build_patches(x_ref[...], cin_p, p1_ref)
    mid = jnp.dot(w1_ref[...], p1_ref[...],
                  preferred_element_type=jnp.float32)            # (Cmid_p, NS)
    mid = jnp.maximum(mid + b1_ref[...], 0.0)                    # bias + ReLU, f32

    # ---- conv2 (3x3, pad=1) -> Identity norm -> ReLU ----
    # Intermediate activation stays in VMEM/vregs; never round-trips to HBM.
    build_patches(mid, cmid_p, p2_ref)
    out = jnp.dot(w2_ref[...], p2_ref[...],
                  preferred_element_type=jnp.float32)            # (Cout, NS)
    out = jnp.maximum(out + b2_ref[...], 0.0)

    o_ref[...] = out.astype(o_ref.dtype)


def init_basic_conv_block_params(key, in_channels, out_channels):
    """PyTorch Conv2d default init (kaiming-uniform bounds), raw OIHW f32 layout."""
    k1, k2, k3, k4 = jax.random.split(key, 4)

    def conv_init(kw, kb, cin, cout):
        bound = 1.0 / (cin * 3 * 3) ** 0.5
        w = jax.random.uniform(kw, (cout, cin, 3, 3), jnp.float32, -bound, bound)
        b = jax.random.uniform(kb, (cout,), jnp.float32, -bound, bound)
        return w, b

    w1, b1 = conv_init(k1, k2, in_channels, out_channels)
    w2, b2 = conv_init(k3, k4, out_channels, out_channels)
    return {"w1": w1, "b1": b1, "w2": w2, "b2": b2}


def fold_conv_params_for_kernel(params):
    """Fold raw OIHW f32 conv params into the kernel's matmul layout.

    Weights -> (Cout_p, 9*Cin_p) bf16 matrices (3x3 taps + input channels folded into
    the MXU contraction dim; channels zero-padded to multiples of 16 so every bf16
    per-tap slab is a whole vreg). Biases -> (Cout_p, 1) f32 columns (zero-padded).
    conv1's output channels are padded (padded rows stay exactly 0 through bias+ReLU),
    conv2's matching input columns are zero, so results are unchanged.
    """
    def fold(w_oihw, cout_p):
        cout, cin, kh, kw = w_oihw.shape
        cin_p = _round_up(cin, _CPAD)
        w = jnp.transpose(w_oihw, (0, 2, 3, 1))                      # (Cout, kh, kw, Cin)
        w = jnp.pad(w, ((0, cout_p - cout), (0, 0), (0, 0), (0, cin_p - cin)))
        return w.reshape(cout_p, kh * kw * cin_p).astype(jnp.bfloat16)

    cmid = params["w1"].shape[0]
    cout = params["w2"].shape[0]
    cmid_p = _round_up(cmid, _CPAD)

    w1 = fold(params["w1"], cmid_p)                                  # (Cmid_p, 9*Cin_p)
    b1 = jnp.pad(params["b1"], (0, cmid_p - cmid)).reshape(-1, 1).astype(jnp.float32)
    w2 = fold(params["w2"], cout)                                    # (Cout, 9*Cmid_p)
    b2 = params["b2"].reshape(-1, 1).astype(jnp.float32)
    return {"w1": w1, "b1": b1, "w2": w2, "b2": b2}


def _make_tap_masks(N, H, W):
    """(9, N*H*W) f32 0/1 validity masks for each 3x3 tap on the flattened lane axis."""
    S = H * W
    s = jnp.arange(N * S, dtype=jnp.int32)
    sl = s % S
    h = sl // W
    w = sl - h * W
    rows = []
    for oy, ox in _TAP_OFFSETS:
        rows.append((h + oy >= 0) & (h + oy < H) & (w + ox >= 0) & (w + ox < W))
    return jnp.stack(rows, axis=0).astype(jnp.float32)


@jax.jit
def basic_conv_block(x_nchw, kparams):
    """BasicConvBlock forward (norm='none' -> Identity, activation=ReLU).

    x_nchw: (N, C_in, H, W) -> (N, C_out, H, W), PyTorch semantics.
    """
    N, cin, H, W = x_nchw.shape
    NS = N * H * W
    w1, b1, w2, b2 = kparams["w1"], kparams["b1"], kparams["w2"], kparams["b2"]
    cin_p = w1.shape[1] // 9
    cmid_p = w1.shape[0]
    cout = w2.shape[0]

    # NCHW -> (C, N*H*W): channels on sublanes, batch+spatial flattened onto lanes
    # (lane dense, one grid step for the whole batch). Tiny one-time channel pad so
    # in-kernel bf16 tap slabs stay 16-sublane aligned.
    x = jnp.transpose(x_nchw, (1, 0, 2, 3)).reshape(cin, NS)
    if cin_p != cin:
        x = jnp.pad(x, ((0, cin_p - cin), (0, 0)))

    # Hoisted per-tap border masks (also prevent cross-image wraparound of the rolls).
    masks = _make_tap_masks(N, H, W)

    kernel = functools.partial(_fused_conv_block_kernel, W=W)

    out = pl.pallas_call(
        kernel,
        out_shape=jax.ShapeDtypeStruct((cout, NS), jnp.float32),
        grid_spec=pltpu.PrefetchScalarGridSpec(
            num_scalar_prefetch=0,
            grid=(1,),
            in_specs=[
                pl.BlockSpec((cin_p, NS), lambda i: (0, 0)),
                pl.BlockSpec((9, NS), lambda i: (0, 0)),
                pl.BlockSpec((cmid_p, 9 * cin_p), lambda i: (0, 0)),
                pl.BlockSpec((cmid_p, 1), lambda i: (0, 0)),
                pl.BlockSpec((cout, 9 * cmid_p), lambda i: (0, 0)),
                pl.BlockSpec((cout, 1), lambda i: (0, 0)),
            ],
            out_specs=pl.BlockSpec((cout, NS), lambda i: (0, 0)),
            scratch_shapes=[
                pltpu.VMEM((9 * cin_p, NS), jnp.bfloat16),
                pltpu.VMEM((9 * cmid_p, NS), jnp.bfloat16),
            ],
        ),
        compiler_params=pltpu.CompilerParams(
            dimension_semantics=("arbitrary",),
        ),
    )(x, masks, w1, b1, w2, b2)

    # (C_out, N*H*W) -> (N, C_out, H, W)
    return jnp.transpose(out.reshape(cout, N, H, W), (1, 0, 2, 3))


def reference_forward(x_nchw, params):
    """Pure-JAX reference: conv3x3(pad=1) + bias -> ReLU, twice (norm = Identity)."""
    def conv3x3_relu(x, w, b):
        y = jax.lax.conv_general_dilated(
            x, w, window_strides=(1, 1), padding=((1, 1), (1, 1)),
            dimension_numbers=("NCHW", "OIHW", "NCHW"))
        return jax.nn.relu(y + b.reshape(1, -1, 1, 1))

    x = conv3x3_relu(x_nchw, params["w1"], params["b1"])
    x = conv3x3_relu(x, params["w2"], params["b2"])
    return x


if __name__ == "__main__":
    key = jax.random.PRNGKey(0)
    k_x, k_p = jax.random.split(key)

    N, C_in, C_out, H, W = 2, 4, 8, 16, 16
    x = jax.random.normal(k_x, (N, C_in, H, W), jnp.float32)
    params = init_basic_conv_block_params(k_p, C_in, C_out)
    kparams = fold_conv_params_for_kernel(params)

    out = basic_conv_block(x, kparams)
    jax.block_until_ready(out)

    # shape + final-ReLU sanity
    assert out.shape == (N, C_out, H, W)
    assert bool(jnp.all(out >= 0.0))

    # correctness vs pure-JAX reference (loose tolerance: bf16 MXU operands, f32 accumulation)
    ref = reference_forward(x, params)
    assert bool(jnp.allclose(out, ref, rtol=5e-2, atol=5e-2)), float(
        jnp.max(jnp.abs(out - ref)))

    print("KERNEL_OK")
</pallas_src>

<mosaic_0001>
module attributes {stable_mosaic.version = 11 : i64} {
  func.func @_fused_conv_block_kernel(%arg0: i32, %arg1: memref<16x512xf32, #tpu.memory_space<vmem>>, %arg2: memref<9x512xf32, #tpu.memory_space<vmem>>, %arg3: memref<16x144xbf16, #tpu.memory_space<vmem>>, %arg4: memref<16x1xf32, #tpu.memory_space<vmem>>, %arg5: memref<8x144xbf16, #tpu.memory_space<vmem>>, %arg6: memref<8x1xf32, #tpu.memory_space<vmem>>, %arg7: memref<8x512xf32, #tpu.memory_space<vmem>>, %arg8: memref<144x512xbf16, #tpu.memory_space<vmem>>, %arg9: memref<144x512xbf16, #tpu.memory_space<vmem>>) attributes {dimension_semantics = [#tpu.dimension_semantics<arbitrary>], iteration_bounds = array<i64: 1>, scalar_prefetch = 0 : i64, scratch_operands = 2 : i64, tpu.core_type = #tpu.core_type<tc>, window_params = [{pipeline_mode = #tpu.pipeline_mode<synchronous>, transform_indices = @transform_0, window_bounds = array<i64: 16, 512>}, {pipeline_mode = #tpu.pipeline_mode<synchronous>, transform_indices = @transform_1, window_bounds = array<i64: 9, 512>}, {pipeline_mode = #tpu.pipeline_mode<synchronous>, transform_indices = @transform_2, window_bounds = array<i64: 16, 144>}, {pipeline_mode = #tpu.pipeline_mode<synchronous>, transform_indices = @transform_3, window_bounds = array<i64: 16, 1>}, {pipeline_mode = #tpu.pipeline_mode<synchronous>, transform_indices = @transform_4, window_bounds = array<i64: 8, 144>}, {pipeline_mode = #tpu.pipeline_mode<synchronous>, transform_indices = @transform_5, window_bounds = array<i64: 8, 1>}, {pipeline_mode = #tpu.pipeline_mode<synchronous>, transform_indices = @transform_6, window_bounds = array<i64: 8, 512>}]} {
    %c0 = arith.constant 0 : index
    %c0_0 = arith.constant 0 : index
    %0 = vector.load %arg1[%c0, %c0_0] : memref<16x512xf32, #tpu.memory_space<vmem>>, vector<16x512xf32>
    %c17_i32 = arith.constant 17 : i32
    %1 = tpu.dynamic_rotate %0 by %c17_i32 dim 1 : vector<16x512xf32>, i32 -> vector<16x512xf32>
    %c0_1 = arith.constant 0 : index
    %c0_2 = arith.constant 0 : index
    %2 = vector.load %arg2[%c0_1, %c0_2] : memref<9x512xf32, #tpu.memory_space<vmem>>, vector<1x512xf32>
    %3 = vector.broadcast %2 : vector<1x512xf32> to vector<16x512xf32>
    %4 = arith.mulf %1, %3 : vector<16x512xf32>
    %5 = arith.truncf %4 : vector<16x512xf32> to vector<16x512xbf16>
    %c0_3 = arith.constant 0 : index
    %c0_4 = arith.constant 0 : index
    %6 = vector.load %arg8[%c0_3, %c0_4] : memref<144x512xbf16, #tpu.memory_space<vmem>>, vector<16x512xbf16>
    tpu.vector_store %arg8[%c0_3, %c0_4], %5 {strides = array<i32>} : memref<144x512xbf16, #tpu.memory_space<vmem>>, vector<16x512xbf16>,
    %c16_i32 = arith.constant 16 : i32
    %7 = tpu.dynamic_rotate %0 by %c16_i32 dim 1 : vector<16x512xf32>, i32 -> vector<16x512xf32>
    %c1 = arith.constant 1 : index
    %c0_5 = arith.constant 0 : index
    %8 = vector.load %arg2[%c1, %c0_5] : memref<9x512xf32, #tpu.memory_space<vmem>>, vector<1x512xf32>
    %9 = vector.broadcast %8 : vector<1x512xf32> to vector<16x512xf32>
    %10 = arith.mulf %7, %9 : vector<16x512xf32>
    %11 = arith.truncf %10 : vector<16x512xf32> to vector<16x512xbf16>
    %c16 = arith.constant 16 : index
    %c0_6 = arith.constant 0 : index
    %12 = vector.load %arg8[%c16, %c0_6] : memref<144x512xbf16, #tpu.memory_space<vmem>>, vector<16x512xbf16>
    tpu.vector_store %arg8[%c16, %c0_6], %11 {strides = array<i32>} : memref<144x512xbf16, #tpu.memory_space<vmem>>, vector<16x512xbf16>,
    %c15_i32 = arith.constant 15 : i32
    %13 = tpu.dynamic_rotate %0 by %c15_i32 dim 1 : vector<16x512xf32>, i32 -> vector<16x512xf32>
    %c2 = arith.constant 2 : index
    %c0_7 = arith.constant 0 : index
    %14 = vector.load %arg2[%c2, %c0_7] : memref<9x512xf32, #tpu.memory_space<vmem>>, vector<1x512xf32>
    %15 = vector.broadcast %14 : vector<1x512xf32> to vector<16x512xf32>
    %16 = arith.mulf %13, %15 : vector<16x512xf32>
    %17 = arith.truncf %16 : vector<16x512xf32> to vector<16x512xbf16>
    %c32 = arith.constant 32 : index
    %c0_8 = arith.constant 0 : index
    %18 = vector.load %arg8[%c32, %c0_8] : memref<144x512xbf16, #tpu.memory_space<vmem>>, vector<16x512xbf16>
    tpu.vector_store %arg8[%c32, %c0_8], %17 {strides = array<i32>} : memref<144x512xbf16, #tpu.memory_space<vmem>>, vector<16x512xbf16>,
    %c1_i32 = arith.constant 1 : i32
    %19 = tpu.dynamic_rotate %0 by %c1_i32 dim 1 : vector<16x512xf32>, i32 -> vector<16x512xf32>
    %c3 = arith.constant 3 : index
    %c0_9 = arith.constant 0 : index
    %20 = vector.load %arg2[%c3, %c0_9] : memref<9x512xf32, #tpu.memory_space<vmem>>, vector<1x512xf32>
    %21 = vector.broadcast %20 : vector<1x512xf32> to vector<16x512xf32>
    %22 = arith.mulf %19, %21 : vector<16x512xf32>
    %23 = arith.truncf %22 : vector<16x512xf32> to vector<16x512xbf16>
    %c48 = arith.constant 48 : index
    %c0_10 = arith.constant 0 : index
    %24 = vector.load %arg8[%c48, %c0_10] : memref<144x512xbf16, #tpu.memory_space<vmem>>, vector<16x512xbf16>
    tpu.vector_store %arg8[%c48, %c0_10], %23 {strides = array<i32>} : memref<144x512xbf16, #tpu.memory_space<vmem>>, vector<16x512xbf16>,
    %c4 = arith.constant 4 : index
    %c0_11 = arith.constant 0 : index
    %25 = vector.load %arg2[%c4, %c0_11] : memref<9x512xf32, #tpu.memory_space<vmem>>, vector<1x512xf32>
    %26 = vector.broadcast %25 : vector<1x512xf32> to vector<16x512xf32>
    %27 = arith.mulf %0, %26 : vector<16x512xf32>
    %28 = arith.truncf %27 : vector<16x512xf32> to vector<16x512xbf16>
    %c64 = arith.constant 64 : index
    %c0_12 = arith.constant 0 : index
    %29 = vector.load %arg8[%c64, %c0_12] : memref<144x512xbf16, #tpu.memory_space<vmem>>, vector<16x512xbf16>
    tpu.vector_store %arg8[%c64, %c0_12], %28 {strides = array<i32>} : memref<144x512xbf16, #tpu.memory_space<vmem>>, vector<16x512xbf16>,
    %c511_i32 = arith.constant 511 : i32
    %30 = tpu.dynamic_rotate %0 by %c511_i32 dim 1 : vector<16x512xf32>, i32 -> vector<16x512xf32>
    %c5 = arith.constant 5 : index
    %c0_13 = arith.constant 0 : index
    %31 = vector.load %arg2[%c5, %c0_13] : memref<9x512xf32, #tpu.memory_space<vmem>>, vector<1x512xf32>
    %32 = vector.broadcast %31 : vector<1x512xf32> to vector<16x512xf32>
    %33 = arith.mulf %30, %32 : vector<16x512xf32>
    %34 = arith.truncf %33 : vector<16x512xf32> to vector<16x512xbf16>
    %c80 = arith.constant 80 : index
    %c0_14 = arith.constant 0 : index
    %35 = vector.load %arg8[%c80, %c0_14] : memref<144x512xbf16, #tpu.memory_space<vmem>>, vector<16x512xbf16>
    tpu.vector_store %arg8[%c80, %c0_14], %34 {strides = array<i32>} : memref<144x512xbf16, #tpu.memory_space<vmem>>, vector<16x512xbf16>,
    %c497_i32 = arith.constant 497 : i32
    %36 = tpu.dynamic_rotate %0 by %c497_i32 dim 1 : vector<16x512xf32>, i32 -> vector<16x512xf32>
    %c6 = arith.constant 6 : index
    %c0_15 = arith.constant 0 : index
    %37 = vector.load %arg2[%c6, %c0_15] : memref<9x512xf32, #tpu.memory_space<vmem>>, vector<1x512xf32>
    %38 = vector.broadcast %37 : vector<1x512xf32> to vector<16x512xf32>
    %39 = arith.mulf %36, %38 : vector<16x512xf32>
    %40 = arith.truncf %39 : vector<16x512xf32> to vector<16x512xbf16>
    %c96 = arith.constant 96 : index
    %c0_16 = arith.constant 0 : index
    %41 = vector.load %arg8[%c96, %c0_16] : memref<144x512xbf16, #tpu.memory_space<vmem>>, vector<16x512xbf16>
    tpu.vector_store %arg8[%c96, %c0_16], %40 {strides = array<i32>} : memref<144x512xbf16, #tpu.memory_space<vmem>>, vector<16x512xbf16>,
    %c496_i32 = arith.constant 496 : i32
    %42 = tpu.dynamic_rotate %0 by %c496_i32 dim 1 : vector<16x512xf32>, i32 -> vector<16x512xf32>
    %c7 = arith.constant 7 : index
    %c0_17 = arith.constant 0 : index
    %43 = vector.load %arg2[%c7, %c0_17] : memref<9x512xf32, #tpu.memory_space<vmem>>, vector<1x512xf32>
    %44 = vector.broadcast %43 : vector<1x512xf32> to vector<16x512xf32>
    %45 = arith.mulf %42, %44 : vector<16x512xf32>
    %46 = arith.truncf %45 : vector<16x512xf32> to vector<16x512xbf16>
    %c112 = arith.constant 112 : index
    %c0_18 = arith.constant 0 : index
    %47 = vector.load %arg8[%c112, %c0_18] : memref<144x512xbf16, #tpu.memory_space<vmem>>, vector<16x512xbf16>
    tpu.vector_store %arg8[%c112, %c0_18], %46 {strides = array<i32>} : memref<144x512xbf16, #tpu.memory_space<vmem>>, vector<16x512xbf16>,
    %c495_i32 = arith.constant 495 : i32
    %48 = tpu.dynamic_rotate %0 by %c495_i32 dim 1 : vector<16x512xf32>, i32 -> vector<16x512xf32>
    %c8 = arith.constant 8 : index
    %c0_19 = arith.constant 0 : index
    %49 = vector.load %arg2[%c8, %c0_19] : memref<9x512xf32, #tpu.memory_space<vmem>>, vector<1x512xf32>
    %50 = vector.broadcast %49 : vector<1x512xf32> to vector<16x512xf32>
    %51 = arith.mulf %48, %50 : vector<16x512xf32>
    %52 = arith.truncf %51 : vector<16x512xf32> to vector<16x512xbf16>
    %c128 = arith.constant 128 : index
    %c0_20 = arith.constant 0 : index
    %53 = vector.load %arg8[%c128, %c0_20] : memref<144x512xbf16, #tpu.memory_space<vmem>>, vector<16x512xbf16>
    tpu.vector_store %arg8[%c128, %c0_20], %52 {strides = array<i32>} : memref<144x512xbf16, #tpu.memory_space<vmem>>, vector<16x512xbf16>,
    %c0_21 = arith.constant 0 : index
    %c0_22 = arith.constant 0 : index
    %54 = vector.load %arg3[%c0_21, %c0_22] : memref<16x144xbf16, #tpu.memory_space<vmem>>, vector<16x144xbf16>
    %c0_23 = arith.constant 0 : index
    %c0_24 = arith.constant 0 : index
    %55 = vector.load %arg8[%c0_23, %c0_24] : memref<144x512xbf16, #tpu.memory_space<vmem>>, vector<144x512xbf16>
    %cst = arith.constant dense<0.000000e+00> : vector<16x512xf32>
    %56 = tpu.matmul %54, %55, %cst {dimension_numbers = #tpu.dot_dimension_numbers<[1], [0], [0], [1], [0, 0, 1, 1], [], []>} : vector<16x144xbf16>, vector<144x512xbf16>, vector<16x512xf32> -> vector<16x512xf32>
    %c0_25 = arith.constant 0 : index
    %c0_26 = arith.constant 0 : index
    %57 = vector.load %arg4[%c0_25, %c0_26] : memref<16x1xf32, #tpu.memory_space<vmem>>, vector<16x1xf32>
    %58 = vector.broadcast %57 : vector<16x1xf32> to vector<16x512xf32>
    %59 = arith.addf %56, %58 : vector<16x512xf32>
    %cst_27 = arith.constant 0.000000e+00 : f32
    %60 = vector.broadcast %cst_27 : f32 to vector<16x512xf32>
    %61 = arith.maximumf %59, %60 : vector<16x512xf32>
    %c17_i32_28 = arith.constant 17 : i32
    %62 = tpu.dynamic_rotate %61 by %c17_i32_28 dim 1 : vector<16x512xf32>, i32 -> vector<16x512xf32>
    %c0_29 = arith.constant 0 : index
    %c0_30 = arith.constant 0 : index
    %63 = vector.load %arg2[%c0_29, %c0_30] : memref<9x512xf32, #tpu.memory_space<vmem>>, vector<1x512xf32>
    %64 = vector.broadcast %63 : vector<1x512xf32> to vector<16x512xf32>
    %65 = arith.mulf %62, %64 : vector<16x512xf32>
    %66 = arith.truncf %65 : vector<16x512xf32> to vector<16x512xbf16>
    %c0_31 = arith.constant 0 : index
    %c0_32 = arith.constant 0 : index
    %67 = vector.load %arg9[%c0_31, %c0_32] : memref<144x512xbf16, #tpu.memory_space<vmem>>, vector<16x512xbf16>
    tpu.vector_store %arg9[%c0_31, %c0_32], %66 {strides = array<i32>} : memref<144x512xbf16, #tpu.memory_space<vmem>>, vector<16x512xbf16>,
    %c16_i32_33 = arith.constant 16 : i32
    %68 = tpu.dynamic_rotate %61 by %c16_i32_33 dim 1 : vector<16x512xf32>, i32 -> vector<16x512xf32>
    %c1_34 = arith.constant 1 : index
    %c0_35 = arith.constant 0 : index
    %69 = vector.load %arg2[%c1_34, %c0_35] : memref<9x512xf32, #tpu.memory_space<vmem>>, vector<1x512xf32>
    %70 = vector.broadcast %69 : vector<1x512xf32> to vector<16x512xf32>
    %71 = arith.mulf %68, %70 : vector<16x512xf32>
    %72 = arith.truncf %71 : vector<16x512xf32> to vector<16x512xbf16>
    %c16_36 = arith.constant 16 : index
    %c0_37 = arith.constant 0 : index
    %73 = vector.load %arg9[%c16_36, %c0_37] : memref<144x512xbf16, #tpu.memory_space<vmem>>, vector<16x512xbf16>
    tpu.vector_store %arg9[%c16_36, %c0_37], %72 {strides = array<i32>} : memref<144x512xbf16, #tpu.memory_space<vmem>>, vector<16x512xbf16>,
    %c15_i32_38 = arith.constant 15 : i32
    %74 = tpu.dynamic_rotate %61 by %c15_i32_38 dim 1 : vector<16x512xf32>, i32 -> vector<16x512xf32>
    %c2_39 = arith.constant 2 : index
    %c0_40 = arith.constant 0 : index
    %75 = vector.load %arg2[%c2_39, %c0_40] : memref<9x512xf32, #tpu.memory_space<vmem>>, vector<1x512xf32>
    %76 = vector.broadcast %75 : vector<1x512xf32> to vector<16x512xf32>
    %77 = arith.mulf %74, %76 : vector<16x512xf32>
    %78 = arith.truncf %77 : vector<16x512xf32> to vector<16x512xbf16>
    %c32_41 = arith.constant 32 : index
    %c0_42 = arith.constant 0 : index
    %79 = vector.load %arg9[%c32_41, %c0_42] : memref<144x512xbf16, #tpu.memory_space<vmem>>, vector<16x512xbf16>
    tpu.vector_store %arg9[%c32_41, %c0_42], %78 {strides = array<i32>} : memref<144x512xbf16, #tpu.memory_space<vmem>>, vector<16x512xbf16>,
    %c1_i32_43 = arith.constant 1 : i32
    %80 = tpu.dynamic_rotate %61 by %c1_i32_43 dim 1 : vector<16x512xf32>, i32 -> vector<16x512xf32>
    %c3_44 = arith.constant 3 : index
    %c0_45 = arith.constant 0 : index
    %81 = vector.load %arg2[%c3_44, %c0_45] : memref<9x512xf32, #tpu.memory_space<vmem>>, vector<1x512xf32>
    %82 = vector.broadcast %81 : vector<1x512xf32> to vector<16x512xf32>
    %83 = arith.mulf %80, %82 : vector<16x512xf32>
    %84 = arith.truncf %83 : vector<16x512xf32> to vector<16x512xbf16>
    %c48_46 = arith.constant 48 : index
    %c0_47 = arith.constant 0 : index
    %85 = vector.load %arg9[%c48_46, %c0_47] : memref<144x512xbf16, #tpu.memory_space<vmem>>, vector<16x512xbf16>
    tpu.vector_store %arg9[%c48_46, %c0_47], %84 {strides = array<i32>} : memref<144x512xbf16, #tpu.memory_space<vmem>>, vector<16x512xbf16>,
    %c4_48 = arith.constant 4 : index
    %c0_49 = arith.constant 0 : index
    %86 = vector.load %arg2[%c4_48, %c0_49] : memref<9x512xf32, #tpu.memory_space<vmem>>, vector<1x512xf32>
    %87 = vector.broadcast %86 : vector<1x512xf32> to vector<16x512xf32>
    %88 = arith.mulf %61, %87 : vector<16x512xf32>
    %89 = arith.truncf %88 : vector<16x512xf32> to vector<16x512xbf16>
    %c64_50 = arith.constant 64 : index
    %c0_51 = arith.constant 0 : index
    %90 = vector.load %arg9[%c64_50, %c0_51] : memref<144x512xbf16, #tpu.memory_space<vmem>>, vector<16x512xbf16>
    tpu.vector_store %arg9[%c64_50, %c0_51], %89 {strides = array<i32>} : memref<144x512xbf16, #tpu.memory_space<vmem>>, vector<16x512xbf16>,
    %c511_i32_52 = arith.constant 511 : i32
    %91 = tpu.dynamic_rotate %61 by %c511_i32_52 dim 1 : vector<16x512xf32>, i32 -> vector<16x512xf32>
    %c5_53 = arith.constant 5 : index
    %c0_54 = arith.constant 0 : index
    %92 = vector.load %arg2[%c5_53, %c0_54] : memref<9x512xf32, #tpu.memory_space<vmem>>, vector<1x512xf32>
    %93 = vector.broadcast %92 : vector<1x512xf32> to vector<16x512xf32>
    %94 = arith.mulf %91, %93 : vector<16x512xf32>
    %95 = arith.truncf %94 : vector<16x512xf32> to vector<16x512xbf16>
    %c80_55 = arith.constant 80 : index
    %c0_56 = arith.constant 0 : index
    %96 = vector.load %arg9[%c80_55, %c0_56] : memref<144x512xbf16, #tpu.memory_space<vmem>>, vector<16x512xbf16>
    tpu.vector_store %arg9[%c80_55, %c0_56], %95 {strides = array<i32>} : memref<144x512xbf16, #tpu.memory_space<vmem>>, vector<16x512xbf16>,
    %c497_i32_57 = arith.constant 497 : i32
    %97 = tpu.dynamic_rotate %61 by %c497_i32_57 dim 1 : vector<16x512xf32>, i32 -> vector<16x512xf32>
    %c6_58 = arith.constant 6 : index
    %c0_59 = arith.constant 0 : index
    %98 = vector.load %arg2[%c6_58, %c0_59] : memref<9x512xf32, #tpu.memory_space<vmem>>, vector<1x512xf32>
    %99 = vector.broadcast %98 : vector<1x512xf32> to vector<16x512xf32>
    %100 = arith.mulf %97, %99 : vector<16x512xf32>
    %101 = arith.truncf %100 : vector<16x512xf32> to vector<16x512xbf16>
    %c96_60 = arith.constant 96 : index
    %c0_61 = arith.constant 0 : index
    %102 = vector.load %arg9[%c96_60, %c0_61] : memref<144x512xbf16, #tpu.memory_space<vmem>>, vector<16x512xbf16>
    tpu.vector_store %arg9[%c96_60, %c0_61], %101 {strides = array<i32>} : memref<144x512xbf16, #tpu.memory_space<vmem>>, vector<16x512xbf16>,
    %c496_i32_62 = arith.constant 496 : i32
    %103 = tpu.dynamic_rotate %61 by %c496_i32_62 dim 1 : vector<16x512xf32>, i32 -> vector<16x512xf32>
    %c7_63 = arith.constant 7 : index
    %c0_64 = arith.constant 0 : index
    %104 = vector.load %arg2[%c7_63, %c0_64] : memref<9x512xf32, #tpu.memory_space<vmem>>, vector<1x512xf32>
    %105 = vector.broadcast %104 : vector<1x512xf32> to vector<16x512xf32>
    %106 = arith.mulf %103, %105 : vector<16x512xf32>
    %107 = arith.truncf %106 : vector<16x512xf32> to vector<16x512xbf16>
    %c112_65 = arith.constant 112 : index
    %c0_66 = arith.constant 0 : index
    %108 = vector.load %arg9[%c112_65, %c0_66] : memref<144x512xbf16, #tpu.memory_space<vmem>>, vector<16x512xbf16>
    tpu.vector_store %arg9[%c112_65, %c0_66], %107 {strides = array<i32>} : memref<144x512xbf16, #tpu.memory_space<vmem>>, vector<16x512xbf16>,
    %c495_i32_67 = arith.constant 495 : i32
    %109 = tpu.dynamic_rotate %61 by %c495_i32_67 dim 1 : vector<16x512xf32>, i32 -> vector<16x512xf32>
    %c8_68 = arith.constant 8 : index
    %c0_69 = arith.constant 0 : index
    %110 = vector.load %arg2[%c8_68, %c0_69] : memref<9x512xf32, #tpu.memory_space<vmem>>, vector<1x512xf32>
    %111 = vector.broadcast %110 : vector<1x512xf32> to vector<16x512xf32>
    %112 = arith.mulf %109, %111 : vector<16x512xf32>
    %113 = arith.truncf %112 : vector<16x512xf32> to vector<16x512xbf16>
    %c128_70 = arith.constant 128 : index
    %c0_71 = arith.constant 0 : index
    %114 = vector.load %arg9[%c128_70, %c0_71] : memref<144x512xbf16, #tpu.memory_space<vmem>>, vector<16x512xbf16>
    tpu.vector_store %arg9[%c128_70, %c0_71], %113 {strides = array<i32>} : memref<144x512xbf16, #tpu.memory_space<vmem>>, vector<16x512xbf16>,
    %c0_72 = arith.constant 0 : index
    %c0_73 = arith.constant 0 : index
    %115 = vector.load %arg5[%c0_72, %c0_73] : memref<8x144xbf16, #tpu.memory_space<vmem>>, vector<8x144xbf16>
    %c0_74 = arith.constant 0 : index
    %c0_75 = arith.constant 0 : index
    %116 = vector.load %arg9[%c0_74, %c0_75] : memref<144x512xbf16, #tpu.memory_space<vmem>>, vector<144x512xbf16>
    %cst_76 = arith.constant dense<0.000000e+00> : vector<8x512xf32>
    %117 = tpu.matmul %115, %116, %cst_76 {dimension_numbers = #tpu.dot_dimension_numbers<[1], [0], [0], [1], [0, 0, 1, 1], [], []>} : vector<8x144xbf16>, vector<144x512xbf16>, vector<8x512xf32> -> vector<8x512xf32>
    %c0_77 = arith.constant 0 : index
    %c0_78 = arith.constant 0 : index
    %118 = vector.load %arg6[%c0_77, %c0_78] : memref<8x1xf32, #tpu.memory_space<vmem>>, vector<8x1xf32>
    %119 = vector.broadcast %118 : vector<8x1xf32> to vector<8x512xf32>
    %120 = arith.addf %117, %119 : vector<8x512xf32>
    %cst_79 = arith.constant 0.000000e+00 : f32
    %121 = vector.broadcast %cst_79 : f32 to vector<8x512xf32>
    %122 = arith.maximumf %120, %121 : vector<8x512xf32>
    %c0_80 = arith.constant 0 : index
    %c0_81 = arith.constant 0 : index
    %123 = vector.load %arg7[%c0_80, %c0_81] : memref<8x512xf32, #tpu.memory_space<vmem>>, vector<8x512xf32>
    tpu.vector_store %arg7[%c0_80, %c0_81], %122 {strides = array<i32>} : memref<8x512xf32, #tpu.memory_space<vmem>>, vector<8x512xf32>,
    return
  }
  func.func @transform_0(%arg0: i32) -> (i32, i32) {
    %c0_i32 = arith.constant 0 : i32
    %c0_i32_0 = arith.constant 0 : i32
    %c0_i32_1 = arith.constant 0 : i32
    return %c0_i32, %c0_i32_0 : i32, i32
  }
  func.func @transform_1(%arg0: i32) -> (i32, i32) {
    %c0_i32 = arith.constant 0 : i32
    %c0_i32_0 = arith.constant 0 : i32
    %c0_i32_1 = arith.constant 0 : i32
    return %c0_i32, %c0_i32_0 : i32, i32
  }
  func.func @transform_2(%arg0: i32) -> (i32, i32) {
    %c0_i32 = arith.constant 0 : i32
    %c0_i32_0 = arith.constant 0 : i32
    %c0_i32_1 = arith.constant 0 : i32
    return %c0_i32, %c0_i32_0 : i32, i32
  }
  func.func @transform_3(%arg0: i32) -> (i32, i32) {
    %c0_i32 = arith.constant 0 : i32
    %c0_i32_0 = arith.constant 0 : i32
    %c0_i32_1 = arith.constant 0 : i32
    return %c0_i32, %c0_i32_0 : i32, i32
  }
  func.func @transform_4(%arg0: i32) -> (i32, i32) {
    %c0_i32 = arith.constant 0 : i32
    %c0_i32_0 = arith.constant 0 : i32
    %c0_i32_1 = arith.constant 0 : i32
    return %c0_i32, %c0_i32_0 : i32, i32
  }
  func.func @transform_5(%arg0: i32) -> (i32, i32) {
    %c0_i32 = arith.constant 0 : i32
    %c0_i32_0 = arith.constant 0 : i32
    %c0_i32_1 = arith.constant 0 : i32
    return %c0_i32, %c0_i32_0 : i32, i32
  }
  func.func @transform_6(%arg0: i32) -> (i32, i32) {
    %c0_i32 = arith.constant 0 : i32
    %c0_i32_0 = arith.constant 0 : i32
    %c0_i32_1 = arith.constant 0 : i32
    return %c0_i32, %c0_i32_0 : i32, i32
  }
}

</mosaic_0001>

<bundles_post_ra>
// kernel: basic_conv_block.1
= control target key start
LH: loop header
LB: loop body
LE: loop exit
PB: predicated region body
PF: predicated region fallthrough
CT: control target
= control target key end

     0   :  { %s1461_s25 = smov 17   ;;  %s1462_s14 = smov 16   ;;  %v48_v8 = vlaneseq  ;;  %vm643_vm1 = vcmask 130048   ;;  %v1469_v26 = vmov 0   ;;  %s2373_s0 = inlined_call_operand.vmem [shape: f32[16,512], index: 0, kind: input, shape index: {}]   ;;  %s2374_s1 = inlined_call_operand.vmem [shape: f32[9,512], index: 1, kind: input, shape index: {}]   ;;  %s2375_s2 = inlined_call_operand.vmem [shape: bf16[16,144], index: 2, kind: input, shape index: {}]   ;;  %s2376_s3 = inlined_call_operand.vmem [shape: f32[16,1], index: 3, kind: input, shape index: {}]   ;;  %s2377_s4 = inlined_call_operand.vmem [shape: bf16[8,144], index: 4, kind: input, shape index: {}]   ;;  %s2378_s5 = inlined_call_operand.vmem [shape: f32[8,1], index: 5, kind: input, shape index: {}]   ;;  %s2379_s6 = inlined_call_operand.vmem [shape: f32[8,512], index: 6, kind: output, shape index: {}]  }
   0x1   :  { %v1508_v0 = vld [vmem:[%s2373_s0 + $0x8] sm:$0xff]  ;;  %v1513_v1 = vld [vmem:[%s2373_s0] sm:$0xff]  ;;  %v1536_v4 = vld [vmem:[%s2373_s0 + $0x30] sm:$0xff]  ;;  %s1464_s15 = smov 1   ;;  %s1465_s16 = smov 127   ;;  %1454 = vset.pattern.permute.xlu0 %v1469_v26  ;;  %1455 = vset.pattern.permute.xlu1 %v1469_v26 }
   0x2   :  { %36 = vrot.lane.b32.xlu1 %v1508_v0, %s1461_s25  ;;  %32 = vrot.lane.b32.xlu0 %v1513_v1, %s1461_s25  ;;  %v1522_v2 = vld [vmem:[%s2373_s0 + $0x28] sm:$0xff]  ;;  %v1527_v3 = vld [vmem:[%s2373_s0 + $0x20] sm:$0xff]  ;;  %s1466_s17 = smov 113   ;;  %s1467_s18 = smov 112   ;;  %v62_v9 = vshrl.u32 %v48_v8, 7  ;;  %v1657_v10 = vand.u32 127, %v48_v8 }
   0x3   :  { %v1541_v5 = vld [vmem:[%s2373_s0 + $0x10] sm:$0xff]  ;;  %v1550_v6 = vld [vmem:[%s2373_s0 + $0x38] sm:$0xff]  ;;  %s1468_s19 = smov 111   ;;  %v1458_v15 = vld [vmem:[%s2375_s2 + $0x4] ss:$8 sps:$4 sm:$0xff]  }
   0x4   :  { %v1555_v7 = vld [vmem:[%s2373_s0 + $0x18] sm:$0xff]  ;;  %s1463_s0 = smov 15   ;;  %v1663_v11 = vsub.s32 1, %v62_v9  ;;  %vm50_vm0 = vcmp.lt.s32.totalorder %v1657_v10, 17  ;;  %1431 = vmatprep.mubr.msk.bf16.mxu0 %vm643_vm1, %v1458_v15  ;;  %1432 = vmatprep.mubr.msk.bf16.mxu1 %vm643_vm1, %v1458_v15  ;;  %v1681_v20 = vsub.s32 2, %v62_v9  ;;  %v1683_v21 = vsub.s32 0, %v62_v9 }
   0x5   :  { %v59_v12 = vld [vmem:[%s2374_s1] ss:$8 sm:$0xf]  ;;  %v1691_v23 = vsub.s32 3, %v62_v9  ;;  %vm113_vm2 = vcmp.lt.s32.totalorder %v1657_v10, 16  ;;  %vm177_vm3 = vcmp.lt.s32.totalorder %v1657_v10, 15 }
   0x6   :  { %38 = vrot.lane.b32.xlu1 %v1522_v2, %s1461_s25  ;;  %34 = vrot.lane.b32.xlu0 %v1527_v3, %s1461_s25  ;;  %v68_v16 = vrot.slane %v59_v12, %v1663_v11  ;;  %v72_v30 = vrot.slane %v59_v12, %v1681_v20  ;;  %v64_v33 = vrot.slane %v59_v12, %v1683_v21  ;;  %v622_v35 = vld [vmem:[%s2376_s3] sm:$0xff]  ;;  %v623_v40 = vld [vmem:[%s2376_s3 + $0x8] sm:$0xff]  ;;  %vm241_vm4 = vcmp.lt.s32.totalorder %v1657_v10, 1 }
   0x7   :  { %v76_v34 = vrot.slane %v59_v12, %v1691_v23  ;;  %v1421_v49 = vld [vmem:[%s2374_s1 + $0x1] ss:$8 sm:$0xf]  ;;  %vm344_vm5 = vcmp.lt.s32.totalorder %v1657_v10, 127  ;;  %vm408_vm6 = vcmp.lt.s32.totalorder %v1657_v10, 113  ;;  %vm472_vm7 = vcmp.lt.s32.totalorder %v1657_v10, 112 }
   0x8   :  { %v132_v55 = vrot.slane %v1421_v49, %v1663_v11  ;;  %v136_v62 = vrot.slane %v1421_v49, %v1681_v20  ;;  %v140_v15 = vrot.slane %v1421_v49, %v1691_v23  ;;  %vm536_vm8 = vcmp.lt.s32.totalorder %v1657_v10, 111 }
   0xa   :  { %42 = vrot.lane.b32.xlu1 %v1536_v4, %s1461_s25  ;;  %40 = vrot.lane.b32.xlu0 %v1541_v5, %s1461_s25 }
   0xe   :  { %46 = vrot.lane.b32.xlu1 %v1550_v6, %s1461_s25  ;;  %44 = vrot.lane.b32.xlu0 %v1555_v7, %s1461_s25 }
  0x12   :  { %99 = vrot.lane.b32.xlu1 %v1527_v3, %s1462_s14  ;;  %97 = vrot.lane.b32.xlu0 %v1513_v1, %s1462_s14 }
  0x16   :  { %103 = vrot.lane.b32.xlu1 %v1522_v2, %s1462_s14  ;;  %101 = vrot.lane.b32.xlu0 %v1508_v0, %s1462_s14 }
  0x1a   :  { %107 = vrot.lane.b32.xlu1 %v1536_v4, %s1462_s14  ;;  %105 = vrot.lane.b32.xlu0 %v1541_v5, %s1462_s14 }
  0x1e   :  { %111 = vrot.lane.b32.xlu1 %v1550_v6, %s1462_s14  ;;  %109 = vrot.lane.b32.xlu0 %v1555_v7, %s1462_s14 }
  0x22   :  { %163 = vrot.lane.b32.xlu1 %v1527_v3, %s1463_s0  ;;  %161 = vrot.lane.b32.xlu0 %v1513_v1, %s1463_s0 }
  0x26   :  { %167 = vrot.lane.b32.xlu1 %v1522_v2, %s1463_s0  ;;  %165 = vrot.lane.b32.xlu0 %v1508_v0, %s1463_s0 }
  0x2a   :  { %171 = vrot.lane.b32.xlu1 %v1536_v4, %s1463_s0  ;;  %169 = vrot.lane.b32.xlu0 %v1541_v5, %s1463_s0 }
  0x2e   :  { %175 = vrot.lane.b32.xlu1 %v1550_v6, %s1463_s0  ;;  %173 = vrot.lane.b32.xlu0 %v1555_v7, %s1463_s0 }
  0x32   :  { %227 = vrot.lane.b32.xlu1 %v1527_v3, %s1464_s15  ;;  %225 = vrot.lane.b32.xlu0 %v1513_v1, %s1464_s15 }
  0x36   :  { %231 = vrot.lane.b32.xlu1 %v1522_v2, %s1464_s15  ;;  %229 = vrot.lane.b32.xlu0 %v1508_v0, %s1464_s15 }
  0x3a   :  { %235 = vrot.lane.b32.xlu1 %v1536_v4, %s1464_s15  ;;  %233 = vrot.lane.b32.xlu0 %v1541_v5, %s1464_s15 }
  0x3e   :  { %239 = vrot.lane.b32.xlu1 %v1550_v6, %s1464_s15  ;;  %237 = vrot.lane.b32.xlu0 %v1555_v7, %s1464_s15 }
  0x42   :  { %330 = vrot.lane.b32.xlu1 %v1527_v3, %s1465_s16  ;;  %328 = vrot.lane.b32.xlu0 %v1513_v1, %s1465_s16 }
  0x46   :  { %334 = vrot.lane.b32.xlu1 %v1522_v2, %s1465_s16  ;;  %332 = vrot.lane.b32.xlu0 %v1508_v0, %s1465_s16 }
  0x4a   :  { %338 = vrot.lane.b32.xlu1 %v1536_v4, %s1465_s16  ;;  %336 = vrot.lane.b32.xlu0 %v1541_v5, %s1465_s16 }
  0x4e   :  { %342 = vrot.lane.b32.xlu1 %v1550_v6, %s1465_s16  ;;  %340 = vrot.lane.b32.xlu0 %v1555_v7, %s1465_s16 }
  0x52   :  { %394 = vrot.lane.b32.xlu1 %v1527_v3, %s1466_s17  ;;  %392 = vrot.lane.b32.xlu0 %v1513_v1, %s1466_s17 }
  0x56   :  { %398 = vrot.lane.b32.xlu1 %v1522_v2, %s1466_s17  ;;  %396 = vrot.lane.b32.xlu0 %v1508_v0, %s1466_s17 }
  0x5a   :  { %402 = vrot.lane.b32.xlu1 %v1536_v4, %s1466_s17  ;;  %400 = vrot.lane.b32.xlu0 %v1541_v5, %s1466_s17 }
  0x5e   :  { %406 = vrot.lane.b32.xlu1 %v1550_v6, %s1466_s17  ;;  %404 = vrot.lane.b32.xlu0 %v1555_v7, %s1466_s17 }
  0x62   :  { %458 = vrot.lane.b32.xlu1 %v1527_v3, %s1467_s18  ;;  %456 = vrot.lane.b32.xlu0 %v1513_v1, %s1467_s18 }
  0x66   :  { %462 = vrot.lane.b32.xlu1 %v1522_v2, %s1467_s18  ;;  %460 = vrot.lane.b32.xlu0 %v1508_v0, %s1467_s18 }
  0x6a   :  { %466 = vrot.lane.b32.xlu1 %v1536_v4, %s1467_s18  ;;  %464 = vrot.lane.b32.xlu0 %v1541_v5, %s1467_s18 }
  0x6e   :  { %470 = vrot.lane.b32.xlu1 %v1550_v6, %s1467_s18  ;;  %468 = vrot.lane.b32.xlu0 %v1555_v7, %s1467_s18 }
  0x72   :  { %522 = vrot.lane.b32.xlu1 %v1527_v3, %s1468_s19  ;;  %520 = vrot.lane.b32.xlu0 %v1513_v1, %s1468_s19 }
  0x74   :  { %v37_v13 = vpop.permute.xlu1 %36  ;;  %v33_v14 = vpop.permute.xlu0 %32 }
  0x75   :  { %v55_v17 = vsel %vm50_vm0, %v33_v14, %v37_v13 }
  0x76   :  { %526 = vrot.lane.b32.xlu1 %v1522_v2, %s1468_s19  ;;  %524 = vrot.lane.b32.xlu0 %v1508_v0, %s1468_s19  ;;  %v82_v24 = vmul.f32 %v68_v16, %v55_v17 }
  0x78   :  { %v39_v18 = vpop.permute.xlu1 %38  ;;  %v35_v19 = vpop.permute.xlu0 %34 }
  0x79   :  { %v56_v22 = vsel %vm50_vm0, %v35_v19, %v39_v18 }
  0x7a   :  { %530 = vrot.lane.b32.xlu1 %v1536_v4, %s1468_s19  ;;  %528 = vrot.lane.b32.xlu0 %v1541_v5, %s1468_s19  ;;  %v86_v25 = vmul.f32 %v68_v16, %v56_v22 }
  0x7c   :  { %v43_v27 = vpop.permute.xlu1 %42  ;;  %v41_v28 = vpop.permute.xlu0 %40  ;;  %v90_v29 = vpack.c.bf16 %v86_v25, %v82_v24 }
  0x7d   :  { %v54_v31 = vsel %vm50_vm0, %v39_v18, %v43_v27  ;;  %v53_v32 = vsel %vm50_vm0, %v37_v13, %v41_v28 }
  0x7e   :  { %534 = vrot.lane.b32.xlu1 %v1550_v6, %s1468_s19  ;;  %532 = vrot.lane.b32.xlu0 %v1555_v7, %s1468_s19  ;;  %v83_v38 = vmul.f32 %v72_v30, %v53_v32  ;;  %v87_v39 = vmul.f32 %v72_v30, %v54_v31  ;;  %v1422_v31 = vld [vmem:[%s2374_s1 + $0x2] ss:$8 sm:$0xf] }
  0x7f   :  { %647 = vmatprep.subr.bf16.mxu0 %v90_v29 }
  0x80   :  { %v47_v36 = vpop.permute.xlu1 %46  ;;  %v45_v37 = vpop.permute.xlu0 %44  ;;  %v91_v54 = vpack.c.bf16 %v87_v39, %v83_v38 }
  0x81   :  { %v58_v41 = vsel %vm50_vm0, %v47_v36, %v35_v19  ;;  %v57_v42 = vsel %vm50_vm0, %v45_v37, %v33_v14  ;;  %v51_v43 = vsel %vm50_vm0, %v41_v28, %v45_v37  ;;  %v52_v44 = vsel %vm50_vm0, %v43_v27, %v47_v36 }
  0x82   :  { %v81_v45 = vmul.f32 %v64_v33, %v57_v42  ;;  %v85_v46 = vmul.f32 %v64_v33, %v58_v41  ;;  %v84_v47 = vmul.f32 %v76_v34, %v51_v43  ;;  %v88_v48 = vmul.f32 %v76_v34, %v52_v44  ;;  %626 = vperm.xlu0 %1454, %v622_v35  }
  0x83   :  { %631 = vperm.xlu1 %1455, %v623_v40   ;;  %v128_v14 = vrot.slane %v1421_v49, %v1683_v21  ;;  %v196_v37 = vrot.slane %v1422_v31, %v1663_v11  ;;  %v200_v44 = vrot.slane %v1422_v31, %v1681_v20 }
  0x84   :  { %v100_v50 = vpop.permute.xlu1 %99  ;;  %v98_v51 = vpop.permute.xlu0 %97  ;;  %v89_v52 = vpack.c.bf16 %v85_v46, %v81_v45  ;;  %v92_v53 = vpack.c.bf16 %v88_v48, %v84_v47 }
  0x86   :  { %648 = vmatpush1.bf16.msra.mxu0 %v89_v52  ;;  %690 = vmatprep.subr.bf16.mxu1 %v92_v53 }
  0x87   :  { %691 = vmatpush1.bf16.msra.mxu1 %v91_v54 }
  0x88   :  { %v104_v56 = vpop.permute.xlu1 %103  ;;  %v102_v57 = vpop.permute.xlu0 %101 }
  0x89   :  { %v119_v58 = vsel %vm113_vm2, %v100_v50, %v104_v56  ;;  %v118_v59 = vsel %vm113_vm2, %v98_v51, %v102_v57 }
  0x8a   :  { %v150_v60 = vmul.f32 %v132_v55, %v119_v58  ;;  %v146_v61 = vmul.f32 %v132_v55, %v118_v59 }
  0x8c   :  { %v108_v63 = vpop.permute.xlu1 %107  ;;  %v106_v8 = vpop.permute.xlu0 %105  ;;  %v154_v9 = vpack.c.bf16 %v150_v60, %v146_v61 }
  0x8d   :  { %v117_v12 = vsel %vm113_vm2, %v104_v56, %v108_v63  ;;  %v116_v13 = vsel %vm113_vm2, %v102_v57, %v106_v8 }
  0x8e   :  { %649 = vmatprep.subr.bf16.mxu0 %v154_v9  ;;  %v151_v16 = vmul.f32 %v136_v62, %v117_v12  ;;  %v147_v17 = vmul.f32 %v136_v62, %v116_v13 }
  0x90   :  { %v112_v18 = vpop.permute.xlu1 %111  ;;  %v110_v19 = vpop.permute.xlu0 %109  ;;  %v155_v36 = vpack.c.bf16 %v151_v16, %v147_v17  ;;  %v1424_v17 = vld [vmem:[%s2374_s1 + $0x4] ss:$8 sm:$0xf] }
  0x91   :  { %v115_v22 = vsel %vm113_vm2, %v108_v63, %v112_v18  ;;  %v121_v24 = vsel %vm113_vm2, %v112_v18, %v100_v50  ;;  %v114_v25 = vsel %vm113_vm2, %v106_v8, %v110_v19  ;;  %v120_v26 = vsel %vm113_vm2, %v110_v19, %v98_v51  ;;  %v1423_v8 = vld [vmem:[%s2374_s1 + $0x3] ss:$8 sm:$0xf] }
  0x92   :  { %v149_v27 = vmul.f32 %v128_v14, %v121_v24  ;;  %v152_v28 = vmul.f32 %v140_v15, %v115_v22  ;;  %v145_v29 = vmul.f32 %v128_v14, %v120_v26  ;;  %v148_v30 = vmul.f32 %v140_v15, %v114_v25 }
  0x93   :  { %v192_v50 = vrot.slane %v1422_v31, %v1683_v21  ;;  %v204_v51 = vrot.slane %v1422_v31, %v1691_v23  ;;  %v260_v16 = vrot.slane %v1423_v8, %v1663_v11 }
  0x94   :  { %v164_v32 = vpop.permute.xlu1 %163  ;;  %v162_v33 = vpop.permute.xlu0 %161  ;;  %v153_v34 = vpack.c.bf16 %v149_v27, %v145_v29  ;;  %v156_v35 = vpack.c.bf16 %v152_v28, %v148_v30  ;;  %v299_v27 = vrot.slane %v1424_v17, %v1663_v11  ;;  %v295_v28 = vrot.slane %v1424_v17, %v1683_v21 }
  0x95   :  { %v264_v29 = vrot.slane %v1423_v8, %v1681_v20 }
  0x96   :  { %650 = vmatpush1.bf16.msra.mxu0 %v153_v34  ;;  %692 = vmatprep.subr.bf16.mxu1 %v156_v35 }
  0x97   :  { %693 = vmatpush1.bf16.msra.mxu1 %v155_v36  ;;  %v256_v36 = vrot.slane %v1423_v8, %v1683_v21 }
  0x98   :  { %v168_v38 = vpop.permute.xlu1 %167  ;;  %v166_v39 = vpop.permute.xlu0 %165 }
  0x99   :  { %v183_v40 = vsel %vm177_vm3, %v164_v32, %v168_v38  ;;  %v182_v41 = vsel %vm177_vm3, %v162_v33, %v166_v39 }
  0x9a   :  { %v214_v42 = vmul.f32 %v196_v37, %v183_v40  ;;  %v210_v43 = vmul.f32 %v196_v37, %v182_v41  ;;  %v268_v37 = vrot.slane %v1423_v8, %v1691_v23  ;;  %v312_v40 = vmul.f32 %v295_v28, %v1513_v1 }
  0x9b   :  { %v316_v41 = vmul.f32 %v295_v28, %v1527_v3 }
  0x9c   :  { %v172_v45 = vpop.permute.xlu1 %171  ;;  %v170_v46 = vpop.permute.xlu0 %169  ;;  %v218_v47 = vpack.c.bf16 %v214_v42, %v210_v43  ;;  %v303_v42 = vrot.slane %v1424_v17, %v1681_v20 }
  0x9d   :  { %v181_v48 = vsel %vm177_vm3, %v168_v38, %v172_v45  ;;  %v180_v49 = vsel %vm177_vm3, %v166_v39, %v170_v46  ;;  %v313_v38 = vmul.f32 %v299_v27, %v1508_v0  ;;  %v317_v39 = vmul.f32 %v299_v27, %v1522_v2 }
  0x9e   :  { %651 = vmatprep.subr.bf16.mxu0 %v218_v47  ;;  %v215_v52 = vmul.f32 %v200_v44, %v181_v48  ;;  %v211_v53 = vmul.f32 %v200_v44, %v180_v49 }
  0xa0   :  { %v176_v54 = vpop.permute.xlu1 %175  ;;  %v174_v55 = vpop.permute.xlu0 %173  ;;  %v219_v15 = vpack.c.bf16 %v215_v52, %v211_v53  ;;  %v321_v53 = vpack.c.bf16 %v317_v39, %v313_v38 }
  0xa1   :  { %v179_v56 = vsel %vm177_vm3, %v172_v45, %v176_v54  ;;  %v185_v57 = vsel %vm177_vm3, %v176_v54, %v164_v32  ;;  %v178_v58 = vsel %vm177_vm3, %v170_v46, %v174_v55  ;;  %v184_v59 = vsel %vm177_vm3, %v174_v55, %v162_v33 }
  0xa2   :  { %v213_v60 = vmul.f32 %v192_v50, %v185_v57  ;;  %v216_v61 = vmul.f32 %v204_v51, %v179_v56  ;;  %v209_v62 = vmul.f32 %v192_v50, %v184_v59  ;;  %v212_v63 = vmul.f32 %v204_v51, %v178_v58 }
  0xa3   :  { %v307_v33 = vrot.slane %v1424_v17, %v1691_v23 }
  0xa4   :  { %v228_v9 = vpop.permute.xlu1 %227  ;;  %v226_v12 = vpop.permute.xlu0 %225  ;;  %v217_v13 = vpack.c.bf16 %v213_v60, %v209_v62  ;;  %v220_v14 = vpack.c.bf16 %v216_v61, %v212_v63  ;;  %v1425_v60 = vld [vmem:[%s2374_s1 + $0x5] ss:$8 sm:$0xf]  ;;  %v320_v61 = vpack.c.bf16 %v316_v41, %v312_v40 }
  0xa5   :  { %v315_v47 = vmul.f32 %v307_v33, %v1555_v7  ;;  %v319_v48 = vmul.f32 %v307_v33, %v1550_v6  ;;  %v314_v7 = vmul.f32 %v303_v42, %v1541_v5  ;;  %v318_v6 = vmul.f32 %v303_v42, %v1536_v4  ;;  %v1426_v42 = vld [vmem:[%s2374_s1 + $0x6] ss:$8 sm:$0xf] }
  0xa6   :  { %652 = vmatpush1.bf16.msra.mxu0 %v217_v13  ;;  %694 = vmatprep.subr.bf16.mxu1 %v220_v14  ;;  %v359_v4 = vrot.slane %v1425_v60, %v1683_v21 }
  0xa7   :  { %695 = vmatpush1.bf16.msra.mxu1 %v219_v15  ;;  %v323_v58 = vpack.c.bf16 %v319_v48, %v315_v47  ;;  %v322_v5 = vpack.c.bf16 %v318_v6, %v314_v7  ;;  %v427_v48 = vrot.slane %v1426_v42, %v1663_v11  ;;  %v435_v7 = vrot.slane %v1426_v42, %v1691_v23 }
  0xa8   :  { %v232_v18 = vpop.permute.xlu1 %231  ;;  %v230_v19 = vpop.permute.xlu0 %229 }
  0xa9   :  { %v247_v22 = vsel %vm241_vm4, %v228_v9, %v232_v18  ;;  %v246_v24 = vsel %vm241_vm4, %v226_v12, %v230_v19 }
  0xaa   :  { %v278_v25 = vmul.f32 %v260_v16, %v247_v22  ;;  %v274_v26 = vmul.f32 %v260_v16, %v246_v24  ;;  %v367_v24 = vrot.slane %v1425_v60, %v1681_v20 }
  0xac   :  { %v236_v30 = vpop.permute.xlu1 %235  ;;  %v234_v31 = vpop.permute.xlu0 %233  ;;  %v282_v32 = vpack.c.bf16 %v278_v25, %v274_v26  ;;  %v371_v25 = vrot.slane %v1425_v60, %v1691_v23 }
  0xad   :  { %v245_v34 = vsel %vm241_vm4, %v232_v18, %v236_v30  ;;  %v244_v35 = vsel %vm241_vm4, %v230_v19, %v234_v31 }
  0xae   :  { %653 = vmatprep.subr.bf16.mxu0 %v282_v32  ;;  %v279_v43 = vmul.f32 %v264_v29, %v245_v34  ;;  %v275_v44 = vmul.f32 %v264_v29, %v244_v35 }
  0xb0   :  { %v240_v45 = vpop.permute.xlu1 %239  ;;  %v238_v46 = vpop.permute.xlu0 %237  ;;  %v283_v59 = vpack.c.bf16 %v279_v43, %v275_v44  ;;  %v423_v43 = vrot.slane %v1426_v42, %v1683_v21 }
  0xb1   :  { %v243_v49 = vsel %vm241_vm4, %v236_v30, %v240_v45  ;;  %v249_v0 = vsel %vm241_vm4, %v240_v45, %v228_v9  ;;  %v242_v1 = vsel %vm241_vm4, %v234_v31, %v238_v46  ;;  %v248_v2 = vsel %vm241_vm4, %v238_v46, %v226_v12 }
  0xb2   :  { %v277_v3 = vmul.f32 %v256_v36, %v249_v0  ;;  %v280_v50 = vmul.f32 %v268_v37, %v243_v49  ;;  %v273_v51 = vmul.f32 %v256_v36, %v248_v2  ;;  %v276_v52 = vmul.f32 %v268_v37, %v242_v1 }
  0xb3   :  { %v363_v12 = vrot.slane %v1425_v60, %v1663_v11 }
  0xb4   :  { %v331_v54 = vpop.permute.xlu1 %330  ;;  %v329_v55 = vpop.permute.xlu0 %328  ;;  %v281_v56 = vpack.c.bf16 %v277_v3, %v273_v51  ;;  %v284_v57 = vpack.c.bf16 %v280_v50, %v276_v52 }
  0xb6   :  { %654 = vmatpush1.bf16.msra.mxu0 %v281_v56  ;;  %696 = vmatprep.subr.bf16.mxu1 %v284_v57 }
  0xb7   :  { %697 = vmatpush1.bf16.msra.mxu1 %v283_v59  ;;  %655 = vmatprep.subr.bf16.mxu0 %v321_v53  ;;  %v431_v53 = vrot.slane %v1426_v42, %v1681_v20 }
  0xb8   :  { %v335_v62 = vpop.permute.xlu1 %334  ;;  %v333_v63 = vpop.permute.xlu0 %332  ;;  %698 = vmatprep.subr.bf16.mxu1 %v323_v58 }
  0xb9   :  { %v350_v8 = vsel %vm344_vm5, %v331_v54, %v335_v62  ;;  %v349_v9 = vsel %vm344_vm5, %v329_v55, %v333_v63 }
  0xba   :  { %656 = vmatpush1.bf16.msra.mxu0 %v320_v61  ;;  %v380_v13 = vmul.f32 %v359_v4, %v350_v8  ;;  %v376_v14 = vmul.f32 %v359_v4, %v349_v9 }
  0xbb   :  { %699 = vmatpush1.bf16.msra.mxu1 %v322_v5 }
  0xbc   :  { %v339_v15 = vpop.permute.xlu1 %338  ;;  %v337_v16 = vpop.permute.xlu0 %336  ;;  %v384_v29 = vpack.c.bf16 %v380_v13, %v376_v14  ;;  %v1427_v13 = vld [vmem:[%s2374_s1 + $0x7] ss:$8 sm:$0xf] }
  0xbd   :  { %v348_v17 = vsel %vm344_vm5, %v335_v62, %v339_v15  ;;  %v347_v18 = vsel %vm344_vm5, %v333_v63, %v337_v16  ;;  %v487_v14 = vrot.slane %v1427_v13, %v1683_v21 }
  0xbe   :  { %v381_v19 = vmul.f32 %v363_v12, %v348_v17  ;;  %v377_v22 = vmul.f32 %v363_v12, %v347_v18 }
  0xc0   :  { %v343_v26 = vpop.permute.xlu1 %342  ;;  %v341_v27 = vpop.permute.xlu0 %340  ;;  %v385_v28 = vpack.c.bf16 %v381_v19, %v377_v22  ;;  %v491_v19 = vrot.slane %v1427_v13, %v1663_v11 }
  0xc1   :  { %v346_v30 = vsel %vm344_vm5, %v339_v15, %v343_v26  ;;  %v352_v31 = vsel %vm344_vm5, %v343_v26, %v331_v54  ;;  %v345_v32 = vsel %vm344_vm5, %v337_v16, %v341_v27  ;;  %v351_v33 = vsel %vm344_vm5, %v341_v27, %v329_v55 }
  0xc2   :  { %v382_v34 = vmul.f32 %v367_v24, %v346_v30  ;;  %v383_v35 = vmul.f32 %v371_v25, %v352_v31  ;;  %v378_v36 = vmul.f32 %v367_v24, %v345_v32  ;;  %v379_v37 = vmul.f32 %v371_v25, %v351_v33  ;;  %657 = vmatprep.subr.bf16.mxu0 %v385_v28 }
  0xc3   :  { %658 = vmatpush1.bf16.msra.mxu0 %v384_v29  ;;  %v495_v31 = vrot.slane %v1427_v13, %v1681_v20  ;;  %v499_v32 = vrot.slane %v1427_v13, %v1691_v23 }
  0xc4   :  { %v395_v38 = vpop.permute.xlu1 %394  ;;  %v393_v39 = vpop.permute.xlu0 %392  ;;  %v387_v40 = vpack.c.bf16 %v383_v35, %v379_v37  ;;  %v386_v41 = vpack.c.bf16 %v382_v34, %v378_v36 }
  0xc6   :  { %700 = vmatprep.subr.bf16.mxu1 %v387_v40 }
  0xc7   :  { %701 = vmatpush1.bf16.msra.mxu1 %v386_v41 }
  0xc8   :  { %v399_v44 = vpop.permute.xlu1 %398  ;;  %v397_v45 = vpop.permute.xlu0 %396 }
  0xc9   :  { %v414_v46 = vsel %vm408_vm6, %v395_v38, %v399_v44  ;;  %v413_v47 = vsel %vm408_vm6, %v393_v39, %v397_v45 }
  0xca   :  { %v444_v49 = vmul.f32 %v423_v43, %v414_v46  ;;  %v440_v0 = vmul.f32 %v423_v43, %v413_v47 }
  0xcc   :  { %v403_v1 = vpop.permute.xlu1 %402  ;;  %v401_v2 = vpop.permute.xlu0 %400  ;;  %v448_v56 = vpack.c.bf16 %v444_v49, %v440_v0  ;;  %v1428_v49 = vld [vmem:[%s2374_s1 + $0x20] ss:$8 sm:$0xf] }
  0xcd   :  { %v412_v3 = vsel %vm408_vm6, %v399_v44, %v403_v1  ;;  %v411_v50 = vsel %vm408_vm6, %v397_v45, %v401_v2  ;;  %v551_v0 = vrot.slane %v1428_v49, %v1683_v21 }
  0xce   :  { %v445_v51 = vmul.f32 %v427_v48, %v412_v3  ;;  %v441_v52 = vmul.f32 %v427_v48, %v411_v50 }
  0xd0   :  { %v407_v6 = vpop.permute.xlu1 %406  ;;  %v405_v54 = vpop.permute.xlu0 %404  ;;  %v449_v55 = vpack.c.bf16 %v445_v51, %v441_v52  ;;  %v555_v51 = vrot.slane %v1428_v49, %v1663_v11 }
  0xd1   :  { %v410_v57 = vsel %vm408_vm6, %v403_v1, %v407_v6  ;;  %v416_v58 = vsel %vm408_vm6, %v407_v6, %v395_v38  ;;  %v409_v59 = vsel %vm408_vm6, %v401_v2, %v405_v54  ;;  %v415_v60 = vsel %vm408_vm6, %v405_v54, %v393_v39 }
  0xd2   :  { %v446_v61 = vmul.f32 %v431_v53, %v410_v57  ;;  %v447_v5 = vmul.f32 %v435_v7, %v416_v58  ;;  %v442_v4 = vmul.f32 %v431_v53, %v409_v59  ;;  %v443_v62 = vmul.f32 %v435_v7, %v415_v60  ;;  %659 = vmatprep.subr.bf16.mxu0 %v449_v55 }
  0xd3   :  { %660 = vmatpush1.bf16.msra.mxu0 %v448_v56  ;;  %v559_v58 = vrot.slane %v1428_v49, %v1681_v20  ;;  %v563_v59 = vrot.slane %v1428_v49, %v1691_v23 }
  0xd4   :  { %v459_v63 = vpop.permute.xlu1 %458  ;;  %v457_v8 = vpop.permute.xlu0 %456  ;;  %v451_v9 = vpack.c.bf16 %v447_v5, %v443_v62  ;;  %v450_v12 = vpack.c.bf16 %v446_v61, %v442_v4 }
  0xd6   :  { %702 = vmatprep.subr.bf16.mxu1 %v451_v9 }
  0xd7   :  { %703 = vmatpush1.bf16.msra.mxu1 %v450_v12 }
  0xd8   :  { %v463_v15 = vpop.permute.xlu1 %462  ;;  %v461_v16 = vpop.permute.xlu0 %460 }
  0xd9   :  { %v478_v17 = vsel %vm472_vm7, %v459_v63, %v463_v15  ;;  %v477_v18 = vsel %vm472_vm7, %v457_v8, %v461_v16 }
  0xda   :  { %v508_v22 = vmul.f32 %v487_v14, %v478_v17  ;;  %v504_v24 = vmul.f32 %v487_v14, %v477_v18 }
  0xdc   :  { %v467_v25 = vpop.permute.xlu1 %466  ;;  %v465_v26 = vpop.permute.xlu0 %464  ;;  %v512_v36 = vpack.c.bf16 %v508_v22, %v504_v24 }
  0xdd   :  { %v476_v27 = vsel %vm472_vm7, %v463_v15, %v467_v25  ;;  %v475_v28 = vsel %vm472_vm7, %v461_v16, %v465_v26  ;;  %v1456_v16 = vld [vmem:[%s2375_s2] ss:$8 sps:$4 sm:$0xff]  }
  0xde   :  { %v509_v29 = vmul.f32 %v491_v19, %v476_v27  ;;  %v505_v30 = vmul.f32 %v491_v19, %v475_v28 }
  0xe0   :  { %v471_v33 = vpop.permute.xlu1 %470  ;;  %v469_v34 = vpop.permute.xlu0 %468  ;;  %v513_v35 = vpack.c.bf16 %v509_v29, %v505_v30 }
  0xe1   :  { %v474_v37 = vsel %vm472_vm7, %v467_v25, %v471_v33  ;;  %v480_v38 = vsel %vm472_vm7, %v471_v33, %v459_v63  ;;  %v473_v39 = vsel %vm472_vm7, %v465_v26, %v469_v34  ;;  %v479_v40 = vsel %vm472_vm7, %v469_v34, %v457_v8  ;;  %v1907_v25 = vld [vmem:[%s2374_s1 + $0x4] ss:$8 sm:$0xf] }
  0xe2   :  { %v510_v41 = vmul.f32 %v495_v31, %v474_v37  ;;  %v511_v42 = vmul.f32 %v499_v32, %v480_v38  ;;  %v506_v43 = vmul.f32 %v495_v31, %v473_v39  ;;  %v507_v44 = vmul.f32 %v499_v32, %v479_v40  ;;  %661 = vmatprep.subr.bf16.mxu0 %v513_v35 }
  0xe3   :  { %662 = vmatpush1.bf16.msra.mxu0 %v512_v36  ;;  %v994_v32 = vrot.slane %v1907_v25, %v1683_v21  ;;  %v1002_v38 = vrot.slane %v1907_v25, %v1681_v20 }
  0xe4   :  { %v523_v45 = vpop.permute.xlu1 %522  ;;  %v521_v46 = vpop.permute.xlu0 %520  ;;  %v515_v47 = vpack.c.bf16 %v511_v42, %v507_v44  ;;  %v514_v48 = vpack.c.bf16 %v510_v41, %v506_v43 }
  0xe6   :  { %704 = vmatprep.subr.bf16.mxu1 %v515_v47 }
  0xe7   :  { %705 = vmatpush1.bf16.msra.mxu1 %v514_v48 }
  0xe8   :  { %v527_v1 = vpop.permute.xlu1 %526  ;;  %v525_v2 = vpop.permute.xlu0 %524 }
  0xe9   :  { %v542_v3 = vsel %vm536_vm8, %v523_v45, %v527_v1  ;;  %v541_v50 = vsel %vm536_vm8, %v521_v46, %v525_v2 }
  0xea   :  { %v572_v52 = vmul.f32 %v551_v0, %v542_v3  ;;  %v568_v53 = vmul.f32 %v551_v0, %v541_v50 }
  0xec   :  { %v531_v7 = vpop.permute.xlu1 %530  ;;  %v529_v6 = vpop.permute.xlu0 %528  ;;  %v576_v4 = vpack.c.bf16 %v572_v52, %v568_v53 }
  0xed   :  { %v540_v54 = vsel %vm536_vm8, %v527_v1, %v531_v7  ;;  %v539_v55 = vsel %vm536_vm8, %v525_v2, %v529_v6 }
  0xee   :  { %v573_v56 = vmul.f32 %v555_v51, %v540_v54  ;;  %v569_v57 = vmul.f32 %v555_v51, %v539_v55 }
  0xf0   :  { %v535_v60 = vpop.permute.xlu1 %534  ;;  %v533_v61 = vpop.permute.xlu0 %532  ;;  %v577_v5 = vpack.c.bf16 %v573_v56, %v569_v57 }
  0xf1   :  { %v538_v62 = vsel %vm536_vm8, %v531_v7, %v535_v60  ;;  %v544_v63 = vsel %vm536_vm8, %v535_v60, %v523_v45  ;;  %v537_v8 = vsel %vm536_vm8, %v529_v6, %v533_v61  ;;  %v543_v9 = vsel %vm536_vm8, %v533_v61, %v521_v46  ;;  %v2022_v7 = vld [vmem:[%s2377_s4] sm:$0xff] }
  0xf2   :  { %v574_v12 = vmul.f32 %v559_v58, %v538_v62  ;;  %v575_v13 = vmul.f32 %v563_v59, %v544_v63  ;;  %v570_v14 = vmul.f32 %v559_v58, %v537_v8  ;;  %v571_v15 = vmul.f32 %v563_v59, %v543_v9  ;;  %663 = vmatprep.subr.bf16.mxu0 %v577_v5  ;;  %v1312_v59 = vld [vmem:[%s2378_s5] sm:$0xff] }
  0xf3   :  { %664 = vmatpush1.bf16.msra.mxu0 %v576_v4  ;;  %2383 = vst [vmem:[#allocation4_spill] sm:$0xff] %v2022_v7  ;;  %v1442_v54 = vcombine.high %v2022_v7, %v2022_v7 }
  0xf4   :  { %v579_v17 = vpack.c.bf16 %v575_v13, %v571_v15  ;;  %v578_v18 = vpack.c.bf16 %v574_v12, %v570_v14 }
  0xf6   :  { %680 = vmatmul.mubr.bf16.vlgmr.msra.gmra.mrb[0].mxu0 %v1456_v16  ;;  %706 = vmatprep.subr.bf16.mxu1 %v579_v17 }
  0xf7   :  { %707 = vmatpush1.bf16.msra.mxu1 %v578_v18  ;;  %1443 = vmatprep.mubr.msk.bf16.mxu0 %vm643_vm1, %v1442_v54 }
  0xfa   :  { %723 = vmatmul.mubr.bf16.vlgmr.msra.gmra.mrb[0].mxu1 %v1456_v16 }
  0xfb   :  { %1444 = vmatprep.mubr.msk.bf16.mxu1 %vm643_vm1, %v1442_v54 }
 0x101   :  { %v627_v19 = vpop.permute.xlu0 %626 }
 0x102   :  { %v632_v24 = vpop.permute.xlu1 %631 }
 0x1c9   :  { %v681_v22 = vpop.f32.mrb[0].mxu0 }
 0x1ca   :  { %v682_v26 = vadd.f32 %v681_v22, %v627_v19  ;;  %v683_v27 = vpop.f32.mrb[1].mxu0 }
 0x1cb   :  { %v685_v28 = vpop.f32.mrb[2].mxu0  ;;  %v684_v49 = vadd.f32 %v683_v27, %v627_v19 }
 0x1cc   :  { %v733_v29 = vmax.f32 %v682_v26, 0.0  ;;  %v686_v30 = vadd.f32 %v685_v28, %v632_v24  ;;  %v687_v31 = vpop.f32.mrb[3].mxu0 }
 0x1cd   :  { %v724_v33 = vpop.f32.mrb[0].mxu1  ;;  %v688_v0 = vadd.f32 %v687_v31, %v632_v24  ;;  %v1956_v1 = vmax.f32 %v684_v49, 0.0 }
 0x1ce   :  { %v737_v34 = vmax.f32 %v686_v30, 0.0  ;;  %v725_v35 = vadd.f32 %v724_v33, %v627_v19  ;;  %v726_v36 = vpop.f32.mrb[1].mxu1  ;;  %741 = vrot.lane.b32.xlu1 %v733_v29, %s1461_s25  ;;  %v1915_v42 = vmul.f32 %v994_v32, %v733_v29  ;;  %v765_v33 = vld [vmem:[%s2374_s1] ss:$8 sm:$0xf] }
 0x1cf   :  { %v728_v37 = vpop.f32.mrb[2].mxu1  ;;  %v727_v2 = vadd.f32 %v726_v36, %v627_v19  ;;  %v1959_v3 = vmax.f32 %v688_v0, 0.0  ;;  %v778_v36 = vrot.slane %v765_v33, %v1681_v20  ;;  %v770_v49 = vrot.slane %v765_v33, %v1683_v21 }
 0x1d0   :  { %v735_v39 = vmax.f32 %v725_v35, 0.0  ;;  %v729_v40 = vadd.f32 %v728_v37, %v632_v24  ;;  %v730_v41 = vpop.f32.mrb[3].mxu1  ;;  %743 = vrot.lane.b32.xlu0 %v737_v34, %s1461_s25  ;;  %v1917_v43 = vmul.f32 %v994_v32, %v737_v34  ;;  %v774_v35 = vrot.slane %v765_v33, %v1663_v11 }
 0x1d1   :  { %v731_v50 = vadd.f32 %v730_v41, %v632_v24  ;;  %v1963_v51 = vmax.f32 %v727_v2, 0.0  ;;  %v782_v0 = vrot.slane %v765_v33, %v1691_v23 }
 0x1d2   :  { %v739_v44 = vmax.f32 %v729_v40, 0.0  ;;  %749 = vrot.lane.b32.xlu1 %v735_v39, %s1461_s25  ;;  %v1923_v46 = vmul.f32 %v1002_v38, %v735_v39 }
 0x1d3   :  { %v1967_v52 = vmax.f32 %v731_v50, 0.0 }
 0x1d4   :  { %751 = vrot.lane.b32.xlu0 %v739_v44, %s1461_s25  ;;  %v1925_v47 = vmul.f32 %v1002_v38, %v739_v44 }
 0x1d6   :  { %803 = vrot.lane.b32.xlu1 %v733_v29, %s1462_s14 }
 0x1d8   :  { %805 = vrot.lane.b32.xlu0 %v737_v34, %s1462_s14 }
 0x1da   :  { %811 = vrot.lane.b32.xlu1 %v735_v39, %s1462_s14 }
 0x1dc   :  { %813 = vrot.lane.b32.xlu0 %v739_v44, %s1462_s14 }
 0x1de   :  { %865 = vrot.lane.b32.xlu1 %v733_v29, %s1463_s0 }
 0x1e0   :  { %867 = vrot.lane.b32.xlu0 %v737_v34, %s1463_s0 }
 0x1e2   :  { %873 = vrot.lane.b32.xlu1 %v735_v39, %s1463_s0 }
 0x1e4   :  { %875 = vrot.lane.b32.xlu0 %v739_v44, %s1463_s0 }
 0x1e6   :  { %927 = vrot.lane.b32.xlu1 %v733_v29, %s1464_s15 }
 0x1e8   :  { %929 = vrot.lane.b32.xlu0 %v737_v34, %s1464_s15 }
 0x1ea   :  { %935 = vrot.lane.b32.xlu1 %v735_v39, %s1464_s15 }
 0x1ec   :  { %937 = vrot.lane.b32.xlu0 %v739_v44, %s1464_s15 }
 0x1ee   :  { %1027 = vrot.lane.b32.xlu1 %v733_v29, %s1465_s16 }
 0x1f0   :  { %1029 = vrot.lane.b32.xlu0 %v737_v34, %s1465_s16 }
 0x1f2   :  { %1035 = vrot.lane.b32.xlu1 %v735_v39, %s1465_s16 }
 0x1f4   :  { %1037 = vrot.lane.b32.xlu0 %v739_v44, %s1465_s16 }
 0x1f6   :  { %1089 = vrot.lane.b32.xlu1 %v733_v29, %s1466_s17 }
 0x1f8   :  { %1091 = vrot.lane.b32.xlu0 %v737_v34, %s1466_s17 }
 0x1fa   :  { %1097 = vrot.lane.b32.xlu1 %v735_v39, %s1466_s17 }
 0x1fc   :  { %1099 = vrot.lane.b32.xlu0 %v739_v44, %s1466_s17 }
 0x1fe   :  { %1151 = vrot.lane.b32.xlu1 %v733_v29, %s1467_s18 }
 0x200   :  { %1153 = vrot.lane.b32.xlu0 %v737_v34, %s1467_s18 }
 0x202   :  { %1159 = vrot.lane.b32.xlu1 %v735_v39, %s1467_s18 }
 0x204   :  { %1161 = vrot.lane.b32.xlu0 %v739_v44, %s1467_s18 }
 0x206   :  { %1213 = vrot.lane.b32.xlu1 %v733_v29, %s1468_s19 }
 0x208   :  { %1215 = vrot.lane.b32.xlu0 %v737_v34, %s1468_s19 }
 0x20a   :  { %1221 = vrot.lane.b32.xlu1 %v735_v39, %s1468_s19 }
 0x20c   :  { %1223 = vrot.lane.b32.xlu0 %v739_v44, %s1468_s19 }
 0x20e   :  { %745 = vrot.lane.b32.xlu1 %v1956_v1, %s1461_s25 }
 0x210   :  { %747 = vrot.lane.b32.xlu0 %v1959_v3, %s1461_s25 }
 0x212   :  { %753 = vrot.lane.b32.xlu1 %v1963_v51, %s1461_s25 }
 0x214   :  { %755 = vrot.lane.b32.xlu0 %v1967_v52, %s1461_s25 }
 0x216   :  { %807 = vrot.lane.b32.xlu1 %v1956_v1, %s1462_s14 }
 0x218   :  { %809 = vrot.lane.b32.xlu0 %v1959_v3, %s1462_s14 }
 0x21a   :  { %815 = vrot.lane.b32.xlu1 %v1963_v51, %s1462_s14 }
 0x21c   :  { %817 = vrot.lane.b32.xlu0 %v1967_v52, %s1462_s14 }
 0x21e   :  { %869 = vrot.lane.b32.xlu1 %v1956_v1, %s1463_s0 }
 0x220   :  { %871 = vrot.lane.b32.xlu0 %v1959_v3, %s1463_s0 }
 0x222   :  { %877 = vrot.lane.b32.xlu1 %v1963_v51, %s1463_s0 }
 0x224   :  { %879 = vrot.lane.b32.xlu0 %v1967_v52, %s1463_s0 }
 0x226   :  { %931 = vrot.lane.b32.xlu1 %v1956_v1, %s1464_s15 }
 0x228   :  { %933 = vrot.lane.b32.xlu0 %v1959_v3, %s1464_s15 }
 0x22a   :  { %939 = vrot.lane.b32.xlu1 %v1963_v51, %s1464_s15 }
 0x22c   :  { %941 = vrot.lane.b32.xlu0 %v1967_v52, %s1464_s15 }
 0x22e   :  { %1031 = vrot.lane.b32.xlu1 %v1956_v1, %s1465_s16 }
 0x230   :  { %1033 = vrot.lane.b32.xlu0 %v1959_v3, %s1465_s16 }
 0x232   :  { %1039 = vrot.lane.b32.xlu1 %v1963_v51, %s1465_s16 }
 0x234   :  { %1041 = vrot.lane.b32.xlu0 %v1967_v52, %s1465_s16 }
 0x236   :  { %1093 = vrot.lane.b32.xlu1 %v1956_v1, %s1466_s17 }
 0x238   :  { %1095 = vrot.lane.b32.xlu0 %v1959_v3, %s1466_s17 }
 0x23a   :  { %1101 = vrot.lane.b32.xlu1 %v1963_v51, %s1466_s17 }
 0x23c   :  { %1103 = vrot.lane.b32.xlu0 %v1967_v52, %s1466_s17 }
 0x23e   :  { %1155 = vrot.lane.b32.xlu1 %v1956_v1, %s1467_s18 }
 0x240   :  { %1157 = vrot.lane.b32.xlu0 %v1959_v3, %s1467_s18  ;;  %v2017_v53 = vpop.permute.xlu1 %741 }
 0x242   :  { %v2024_v6 = vpop.permute.xlu0 %743  ;;  %1163 = vrot.lane.b32.xlu1 %v1963_v51, %s1467_s18 }
 0x244   :  { %1165 = vrot.lane.b32.xlu0 %v1967_v52, %s1467_s18  ;;  %v750_v55 = vpop.permute.xlu1 %749 }
 0x246   :  { %v752_v56 = vpop.permute.xlu0 %751  ;;  %1217 = vrot.lane.b32.xlu1 %v1956_v1, %s1468_s19 }
 0x248   :  { %1219 = vrot.lane.b32.xlu0 %v1959_v3, %s1468_s19  ;;  %v2038_v57 = vpop.permute.xlu1 %803 }
 0x24a   :  { %v2040_v58 = vpop.permute.xlu0 %805  ;;  %1225 = vrot.lane.b32.xlu1 %v1963_v51, %s1468_s19 }
 0x24c   :  { %1227 = vrot.lane.b32.xlu0 %v1967_v52, %s1468_s19  ;;  %v2049_v60 = vpop.permute.xlu1 %811 }
 0x24e   :  { %v2051_v61 = vpop.permute.xlu0 %813  ;;  %1315 = vperm.xlu1 %1455, %v1312_v59  }
 0x250   :  { %v2053_v5 = vpop.permute.xlu1 %865 }
 0x252   :  { %v2055_v4 = vpop.permute.xlu0 %867 }
 0x254   :  { %v2057_v62 = vpop.permute.xlu1 %873 }
 0x256   :  { %v2059_v63 = vpop.permute.xlu0 %875 }
 0x258   :  { %v2061_v8 = vpop.permute.xlu1 %927 }
 0x25a   :  { %v2063_v9 = vpop.permute.xlu0 %929 }
 0x25c   :  { %v2065_v12 = vpop.permute.xlu1 %935 }
 0x25e   :  { %v2067_v13 = vpop.permute.xlu0 %937 }
 0x260   :  { %v2069_v14 = vpop.permute.xlu1 %1027 }
 0x262   :  { %v2071_v15 = vpop.permute.xlu0 %1029 }
 0x264   :  { %v2073_v16 = vpop.permute.xlu1 %1035 }
 0x266   :  { %v2075_v17 = vpop.permute.xlu0 %1037 }
 0x268   :  { %v2077_v18 = vpop.permute.xlu1 %1089 }
 0x26a   :  { %v2079_v19 = vpop.permute.xlu0 %1091 }
 0x26c   :  { %v2081_v22 = vpop.permute.xlu1 %1097 }
 0x26e   :  { %v2083_v24 = vpop.permute.xlu0 %1099 }
 0x270   :  { %v2085_v26 = vpop.permute.xlu1 %1151 }
 0x272   :  { %v2087_v27 = vpop.permute.xlu0 %1153 }
 0x274   :  { %v2089_v28 = vpop.permute.xlu1 %1159 }
 0x276   :  { %v2091_v29 = vpop.permute.xlu0 %1161 }
 0x278   :  { %v2093_v30 = vpop.permute.xlu1 %1213 }
 0x27a   :  { %v2095_v31 = vpop.permute.xlu0 %1215 }
 0x27b   :  { %2384 = vst [vmem:[#allocation5_spill] sm:$0xff] %v2095_v31 }
 0x27c   :  { %v2097_v32 = vpop.permute.xlu1 %1221 }
 0x27e   :  { %v2102_v34 = vpop.permute.xlu0 %1223 }
 0x27f   :  { %2385 = vst [vmem:[#allocation6_spill] sm:$0xff] %v2102_v34 }
 0x280   :  { %v746_v37 = vpop.permute.xlu1 %745 }
 0x281   :  { %v759_v38 = vsel %vm50_vm0, %v746_v37, %v750_v55  ;;  %v761_v39 = vsel %vm50_vm0, %v2017_v53, %v746_v37  ;;  %v1433_v37 = vld [vmem:[%s2374_s1 + $0x1] ss:$8 sm:$0xf] }
 0x282   :  { %v748_v40 = vpop.permute.xlu0 %747  ;;  %v788_v2 = vmul.f32 %v774_v35, %v761_v39  ;;  %v789_v50 = vmul.f32 %v778_v36, %v759_v38  ;;  %v840_v38 = vrot.slane %v1433_v37, %v1681_v20 }
 0x283   :  { %v760_v41 = vsel %vm50_vm0, %v748_v40, %v752_v56  ;;  %v762_v44 = vsel %vm50_vm0, %v2024_v6, %v748_v40 }
 0x284   :  { %v792_v54 = vmul.f32 %v774_v35, %v762_v44  ;;  %v793_v59 = vmul.f32 %v778_v36, %v760_v41  ;;  %v754_v48 = vpop.permute.xlu1 %753  ;;  %v836_v36 = vrot.slane %v1433_v37, %v1663_v11 }
 0x285   :  { %v757_v45 = vsel %vm50_vm0, %v750_v55, %v754_v48  ;;  %v763_v40 = vsel %vm50_vm0, %v754_v48, %v2017_v53 }
 0x286   :  { %v797_v7 = vpack.c.bf16 %v793_v59, %v789_v50  ;;  %v756_v31 = vpop.permute.xlu0 %755  ;;  %v796_v34 = vpack.c.bf16 %v792_v54, %v788_v2  ;;  %v787_v39 = vmul.f32 %v770_v49, %v763_v40  ;;  %v790_v55 = vmul.f32 %v782_v0, %v757_v45 }
 0x287   :  { %v758_v33 = vsel %vm50_vm0, %v752_v56, %v756_v31  ;;  %v764_v35 = vsel %vm50_vm0, %v756_v31, %v2024_v6  ;;  %v832_v50 = vrot.slane %v1433_v37, %v1683_v21 }
 0x288   :  { %v791_v41 = vmul.f32 %v770_v49, %v764_v35  ;;  %v794_v44 = vmul.f32 %v782_v0, %v758_v33  ;;  %1327 = vmatprep.subr.bf16.mxu0 %v796_v34  ;;  %v808_v48 = vpop.permute.xlu1 %807  ;;  %v844_v49 = vrot.slane %v1433_v37, %v1691_v23  ;;  %v1434_v35 = vld [vmem:[%s2374_s1 + $0x2] ss:$8 sm:$0xf] }
 0x289   :  { %v821_v53 = vsel %vm113_vm2, %v808_v48, %v2049_v60  ;;  %v823_v56 = vsel %vm113_vm2, %v2038_v57, %v808_v48  ;;  %v898_v48 = vrot.slane %v1434_v35, %v1663_v11 }
 0x28a   :  { %v795_v2 = vpack.c.bf16 %v791_v41, %v787_v39  ;;  %v810_v6 = vpop.permute.xlu0 %809  ;;  %v798_v31 = vpack.c.bf16 %v794_v44, %v790_v55  ;;  %v850_v54 = vmul.f32 %v836_v36, %v823_v56  ;;  %v851_v0 = vmul.f32 %v840_v38, %v821_v53 }
 0x28b   :  { %v822_v45 = vsel %vm113_vm2, %v810_v6, %v2051_v61  ;;  %v824_v34 = vsel %vm113_vm2, %v2040_v58, %v810_v6 }
 0x28c   :  { %v854_v59 = vmul.f32 %v836_v36, %v824_v34  ;;  %v855_v40 = vmul.f32 %v840_v38, %v822_v45  ;;  %1328 = vmatpush1.bf16.msra.mxu0 %v795_v2  ;;  %1368 = vmatprep.subr.bf16.mxu1 %v798_v31  ;;  %v816_v33 = vpop.permute.xlu1 %815  ;;  %v894_v45 = vrot.slane %v1434_v35, %v1683_v21 }
 0x28d   :  { %v819_v39 = vsel %vm113_vm2, %v2049_v60, %v816_v33  ;;  %v825_v55 = vsel %vm113_vm2, %v816_v33, %v2038_v57  ;;  %1369 = vmatpush1.bf16.msra.mxu1 %v797_v7  ;;  %v902_v60 = vrot.slane %v1434_v35, %v1681_v20 }
 0x28e   :  { %v859_v37 = vpack.c.bf16 %v855_v40, %v851_v0  ;;  %v818_v41 = vpop.permute.xlu0 %817  ;;  %v858_v36 = vpack.c.bf16 %v854_v59, %v850_v54  ;;  %v849_v53 = vmul.f32 %v832_v50, %v825_v55  ;;  %v852_v56 = vmul.f32 %v844_v49, %v819_v39  ;;  %v1435_v55 = vld [vmem:[%s2374_s1 + $0x3] ss:$8 sm:$0xf] }
 0x28f   :  { %v820_v38 = vsel %vm113_vm2, %v2051_v61, %v818_v41  ;;  %v826_v44 = vsel %vm113_vm2, %v818_v41, %v2040_v58  ;;  %v906_v0 = vrot.slane %v1434_v35, %v1691_v23 }
 0x290   :  { %v853_v2 = vmul.f32 %v832_v50, %v826_v44  ;;  %v856_v57 = vmul.f32 %v844_v49, %v820_v38  ;;  %1329 = vmatprep.subr.bf16.mxu0 %v858_v36  ;;  %v870_v7 = vpop.permute.xlu1 %869 }
 0x291   :  { %v883_v6 = vsel %vm177_vm3, %v870_v7, %v2057_v62  ;;  %v885_v61 = vsel %vm177_vm3, %v2053_v5, %v870_v7 }
 0x292   :  { %v857_v31 = vpack.c.bf16 %v853_v2, %v849_v53  ;;  %v872_v58 = vpop.permute.xlu0 %871  ;;  %v860_v54 = vpack.c.bf16 %v856_v57, %v852_v56  ;;  %v912_v34 = vmul.f32 %v898_v48, %v885_v61  ;;  %v913_v59 = vmul.f32 %v902_v60, %v883_v6 }
 0x293   :  { %v884_v50 = vsel %vm177_vm3, %v872_v58, %v2059_v63  ;;  %v886_v49 = vsel %vm177_vm3, %v2055_v4, %v872_v58  ;;  %v960_v53 = vrot.slane %v1435_v55, %v1663_v11  ;;  %v956_v58 = vrot.slane %v1435_v55, %v1683_v21 }
 0x294   :  { %v916_v40 = vmul.f32 %v898_v48, %v886_v49  ;;  %v917_v33 = vmul.f32 %v902_v60, %v884_v50  ;;  %1330 = vmatpush1.bf16.msra.mxu0 %v857_v31  ;;  %1370 = vmatprep.subr.bf16.mxu1 %v860_v54  ;;  %v878_v39 = vpop.permute.xlu1 %877  ;;  %v1006_v54 = vrot.slane %v1907_v25, %v1691_v23 }
 0x295   :  { %v881_v41 = vsel %vm177_vm3, %v2057_v62, %v878_v39  ;;  %v887_v36 = vsel %vm177_vm3, %v878_v39, %v2053_v5  ;;  %1371 = vmatpush1.bf16.msra.mxu1 %v859_v37  ;;  %v964_v62 = vrot.slane %v1435_v55, %v1681_v20  ;;  %v968_v49 = vrot.slane %v1435_v55, %v1691_v23 }
 0x296   :  { %v921_v35 = vpack.c.bf16 %v917_v33, %v913_v59  ;;  %v880_v38 = vpop.permute.xlu0 %879  ;;  %v920_v44 = vpack.c.bf16 %v916_v40, %v912_v34  ;;  %v911_v56 = vmul.f32 %v894_v45, %v887_v36  ;;  %v914_v2 = vmul.f32 %v906_v0, %v881_v41 }
 0x297   :  { %v882_v48 = vsel %vm177_vm3, %v2059_v63, %v880_v38  ;;  %v888_v60 = vsel %vm177_vm3, %v880_v38, %v2055_v4  ;;  %v998_v4 = vrot.slane %v1907_v25, %v1663_v11  ;;  %v1437_v25 = vld [vmem:[%s2374_s1 + $0x5] ss:$8 sm:$0xf] }
 0x298   :  { %v915_v57 = vmul.f32 %v894_v45, %v888_v60  ;;  %v918_v5 = vmul.f32 %v906_v0, %v882_v48  ;;  %1331 = vmatprep.subr.bf16.mxu0 %v920_v44  ;;  %v932_v37 = vpop.permute.xlu1 %931  ;;  %v1018_v60 = vmul.f32 %v1006_v54, %v1967_v52 }
 0x299   :  { %v945_v7 = vsel %vm241_vm4, %v932_v37, %v2065_v12  ;;  %v947_v63 = vsel %vm241_vm4, %v2061_v8, %v932_v37  ;;  %v1016_v55 = vmul.f32 %v998_v4, %v1959_v3  ;;  %v1012_v48 = vmul.f32 %v998_v4, %v1956_v1 }
 0x29a   :  { %v919_v6 = vpack.c.bf16 %v915_v57, %v911_v56  ;;  %v934_v61 = vpop.permute.xlu0 %933  ;;  %v922_v31 = vpack.c.bf16 %v918_v5, %v914_v2  ;;  %v974_v45 = vmul.f32 %v960_v53, %v947_v63  ;;  %v975_v0 = vmul.f32 %v964_v62, %v945_v7 }
 0x29b   :  { %v946_v34 = vsel %vm241_vm4, %v934_v61, %v2067_v13  ;;  %v948_v50 = vsel %vm241_vm4, %v2063_v9, %v934_v61  ;;  %v1020_v57 = vpack.c.bf16 %v1016_v55, %v1012_v48  ;;  %v1056_v5 = vrot.slane %v1437_v25, %v1683_v21  ;;  %v1438_v61 = vld [vmem:[%s2374_s1 + $0x6] ss:$8 sm:$0xf] }
 0x29c   :  { %v978_v59 = vmul.f32 %v960_v53, %v948_v50  ;;  %v979_v40 = vmul.f32 %v964_v62, %v946_v34  ;;  %1332 = vmatpush1.bf16.msra.mxu0 %v919_v6  ;;  %1372 = vmatprep.subr.bf16.mxu1 %v922_v31  ;;  %v940_v33 = vpop.permute.xlu1 %939  ;;  %v1064_v4 = vrot.slane %v1437_v25, %v1681_v20 }
 0x29d   :  { %v943_v39 = vsel %vm241_vm4, %v2065_v12, %v940_v33  ;;  %v949_v41 = vsel %vm241_vm4, %v940_v33, %v2061_v8  ;;  %1373 = vmatpush1.bf16.msra.mxu1 %v921_v35  ;;  %v1060_v8 = vrot.slane %v1437_v25, %v1663_v11  ;;  %v1014_v35 = vmul.f32 %v1006_v54, %v1963_v51 }
 0x29e   :  { %v983_v36 = vpack.c.bf16 %v979_v40, %v975_v0  ;;  %v942_v38 = vpop.permute.xlu0 %941  ;;  %v982_v44 = vpack.c.bf16 %v978_v59, %v974_v45  ;;  %v973_v3 = vmul.f32 %v956_v58, %v949_v41  ;;  %v976_v62 = vmul.f32 %v968_v49, %v943_v39 }
 0x29f   :  { %v944_v53 = vsel %vm241_vm4, %v2067_v13, %v942_v38  ;;  %v950_v12 = vsel %vm241_vm4, %v942_v38, %v2063_v9  ;;  %v1022_v7 = vpack.c.bf16 %v1018_v60, %v1014_v35  ;;  %v1068_v6 = vrot.slane %v1437_v25, %v1691_v23 }
 0x2a0   :  { %v977_v56 = vmul.f32 %v956_v58, %v950_v12  ;;  %v980_v2 = vmul.f32 %v968_v49, %v944_v53  ;;  %1333 = vmatprep.subr.bf16.mxu0 %v982_v44  ;;  %v1032_v1 = vpop.permute.xlu1 %1031  ;;  %v1118_v59 = vrot.slane %v1438_v61, %v1683_v21  ;;  %v1122_v39 = vrot.slane %v1438_v61, %v1663_v11 }
 0x2a1   :  { %v1045_v52 = vsel %vm344_vm5, %v1032_v1, %v2073_v16  ;;  %v1047_v31 = vsel %vm344_vm5, %v2069_v14, %v1032_v1  ;;  %v2386_v44 = vpack.c.bf16 %v1917_v43, %v1915_v42  ;;  %v1126_v42 = vrot.slane %v1438_v61, %v1681_v20  ;;  %v1439_v1 = vld [vmem:[%s2374_s1 + $0x7] ss:$8 sm:$0xf] }
 0x2a2   :  { %v981_v13 = vpack.c.bf16 %v977_v56, %v973_v3  ;;  %v1034_v37 = vpop.permute.xlu0 %1033  ;;  %v984_v9 = vpack.c.bf16 %v980_v2, %v976_v62  ;;  %v1074_v58 = vmul.f32 %v1060_v8, %v1045_v52  ;;  %v1073_v33 = vmul.f32 %v1056_v5, %v1047_v31 }
 0x2a3   :  { %v1046_v51 = vsel %vm344_vm5, %v1034_v37, %v2075_v17  ;;  %v1048_v63 = vsel %vm344_vm5, %v2071_v15, %v1034_v37  ;;  %v1130_v62 = vrot.slane %v1438_v61, %v1691_v23 }
 0x2a4   :  { %v1078_v54 = vmul.f32 %v1060_v8, %v1046_v51  ;;  %1334 = vmatpush1.bf16.msra.mxu0 %v981_v13  ;;  %1374 = vmatprep.subr.bf16.mxu1 %v984_v9  ;;  %v1040_v45 = vpop.permute.xlu1 %1039  ;;  %v1077_v49 = vmul.f32 %v1056_v5, %v1048_v63  ;;  %v1180_v51 = vrot.slane %v1439_v1, %v1683_v21 }
 0x2a5   :  { %v1043_v34 = vsel %vm344_vm5, %v2073_v16, %v1040_v45  ;;  %v1049_v50 = vsel %vm344_vm5, %v1040_v45, %v2069_v14  ;;  %1335 = vmatprep.subr.bf16.mxu0 %v1020_v57  ;;  %1375 = vmatpush1.bf16.msra.mxu1 %v983_v36 }
 0x2a6   :  { %v1042_v0 = vpop.permute.xlu0 %1041  ;;  %1376 = vmatprep.subr.bf16.mxu1 %v1022_v7  ;;  %v1082_v40 = vpack.c.bf16 %v1078_v54, %v1074_v58  ;;  %v1075_v14 = vmul.f32 %v1064_v4, %v1043_v34  ;;  %v1076_v41 = vmul.f32 %v1068_v6, %v1049_v50  ;;  %v1081_v60 = vpack.c.bf16 %v1077_v49, %v1073_v33 }
 0x2a7   :  { %v1044_v25 = vsel %vm344_vm5, %v2075_v17, %v1042_v0  ;;  %v1050_v16 = vsel %vm344_vm5, %v1042_v0, %v2071_v15  ;;  %v2387_v15 = vpack.c.bf16 %v1925_v47, %v1923_v46  ;;  %v1188_v50 = vrot.slane %v1439_v1, %v1681_v20 }
 0x2a8   :  { %v1079_v55 = vmul.f32 %v1064_v4, %v1044_v25  ;;  %v1080_v36 = vmul.f32 %v1068_v6, %v1050_v16  ;;  %v1094_v38 = vpop.permute.xlu1 %1093  ;;  %1336 = vmatpush1.bf16.msra.mxu0 %v2386_v44  ;;  %v1192_v49 = vrot.slane %v1439_v1, %v1691_v23  ;;  %v1440_v16 = vld [vmem:[%s2374_s1 + $0x20] ss:$8 sm:$0xf] }
 0x2a9   :  { %v1107_v48 = vsel %vm408_vm6, %v1094_v38, %v2081_v22  ;;  %v1109_v17 = vsel %vm408_vm6, %v2077_v18, %v1094_v38  ;;  %1337 = vmatprep.subr.bf16.mxu0 %v1082_v40  ;;  %1377 = vmatpush1.bf16.msra.mxu1 %v2387_v15 }
 0x2aa   :  { %v1083_v53 = vpack.c.bf16 %v1079_v55, %v1075_v14  ;;  %v1096_v12 = vpop.permute.xlu0 %1095  ;;  %v1084_v8 = vpack.c.bf16 %v1080_v36, %v1076_v41  ;;  %v1135_v43 = vmul.f32 %v1118_v59, %v1109_v17  ;;  %v1136_v56 = vmul.f32 %v1122_v39, %v1107_v48 }
 0x2ab   :  { %v1108_v35 = vsel %vm408_vm6, %v1096_v12, %v2083_v24  ;;  %v1110_v3 = vsel %vm408_vm6, %v2079_v19, %v1096_v12  ;;  %v1242_v48 = vrot.slane %v1440_v16, %v1683_v21 }
 0x2ac   :  { %v1139_v46 = vmul.f32 %v1118_v59, %v1110_v3  ;;  %v1140_v47 = vmul.f32 %v1122_v39, %v1108_v35  ;;  %1378 = vmatprep.subr.bf16.mxu1 %v1084_v8  ;;  %v1102_v2 = vpop.permute.xlu1 %1101  ;;  %1338 = vmatpush1.bf16.msra.mxu0 %v1081_v60  ;;  %v1250_v3 = vrot.slane %v1440_v16, %v1681_v20 }
 0x2ad   :  { %v1105_v52 = vsel %vm408_vm6, %v2081_v22, %v1102_v2  ;;  %v1111_v57 = vsel %vm408_vm6, %v1102_v2, %v2077_v18  ;;  %1379 = vmatpush1.bf16.msra.mxu1 %v1083_v53  ;;  %v1184_v22 = vrot.slane %v1439_v1, %v1663_v11 }
 0x2ae   :  { %v1143_v13 = vpack.c.bf16 %v1139_v46, %v1135_v43  ;;  %v1104_v5 = vpop.permute.xlu0 %1103  ;;  %v1144_v37 = vpack.c.bf16 %v1140_v47, %v1136_v56  ;;  %v1137_v63 = vmul.f32 %v1126_v42, %v1105_v52  ;;  %v1138_v4 = vmul.f32 %v1130_v62, %v1111_v57  ;;  %v2389_v43 = vld [vmem:[#allocation5_spill] sm:$0xff] }
 0x2af   :  { %v1106_v9 = vsel %vm408_vm6, %v2083_v24, %v1104_v5  ;;  %v1112_v7 = vsel %vm408_vm6, %v1104_v5, %v2079_v19 }
 0x2b0   :  { %v1141_v6 = vmul.f32 %v1126_v42, %v1106_v9  ;;  %v1142_v18 = vmul.f32 %v1130_v62, %v1112_v7  ;;  %v1156_v61 = vpop.permute.xlu1 %1155  ;;  %1339 = vmatprep.subr.bf16.mxu0 %v1144_v37  ;;  %v2388_v42 = vld [vmem:[#allocation6_spill] sm:$0xff]  ;;  %v1254_v62 = vrot.slane %v1440_v16, %v1691_v23  ;;  %v2390_v9 = vld [vmem:[#allocation4_spill] sm:$0xff] }
 0x2b1   :  { %v1169_v31 = vsel %vm472_vm7, %v1156_v61, %v2089_v28  ;;  %v1171_v24 = vsel %vm472_vm7, %v2085_v26, %v1156_v61  ;;  %1340 = vmatpush1.bf16.msra.mxu0 %v1143_v13  ;;  %v1441_v7 = vcombine.low %v2390_v9, %v2390_v9 }
 0x2b2   :  { %v1145_v19 = vpack.c.bf16 %v1141_v6, %v1137_v63  ;;  %v1158_v58 = vpop.permute.xlu0 %1157  ;;  %v1146_v54 = vpack.c.bf16 %v1142_v18, %v1138_v4  ;;  %v1197_v0 = vmul.f32 %v1180_v51, %v1171_v24  ;;  %v1198_v59 = vmul.f32 %v1184_v22, %v1169_v31 }
 0x2b3   :  { %v1170_v45 = vsel %vm472_vm7, %v1158_v58, %v2091_v29  ;;  %v1172_v34 = vsel %vm472_vm7, %v2087_v27, %v1158_v58 }
 0x2b4   :  { %v1201_v40 = vmul.f32 %v1180_v51, %v1172_v34  ;;  %v1202_v33 = vmul.f32 %v1184_v22, %v1170_v45  ;;  %1380 = vmatprep.subr.bf16.mxu1 %v1146_v54  ;;  %v1164_v25 = vpop.permute.xlu1 %1163 }
 0x2b5   :  { %v1167_v39 = vsel %vm472_vm7, %v2089_v28, %v1164_v25  ;;  %v1173_v14 = vsel %vm472_vm7, %v1164_v25, %v2085_v26  ;;  %1381 = vmatpush1.bf16.msra.mxu1 %v1145_v19  ;;  %v1246_v28 = vrot.slane %v1440_v16, %v1663_v11 }
 0x2b6   :  { %v1205_v41 = vpack.c.bf16 %v1201_v40, %v1197_v0  ;;  %v1166_v55 = vpop.permute.xlu0 %1165  ;;  %v1206_v36 = vpack.c.bf16 %v1202_v33, %v1198_v59  ;;  %v1199_v17 = vmul.f32 %v1188_v50, %v1167_v39  ;;  %v1200_v15 = vmul.f32 %v1192_v49, %v1173_v14 }
 0x2b7   :  { %v1168_v38 = vsel %vm472_vm7, %v2091_v29, %v1166_v55  ;;  %v1174_v44 = vsel %vm472_vm7, %v1166_v55, %v2087_v27 }
 0x2b8   :  { %v1203_v60 = vmul.f32 %v1188_v50, %v1168_v38  ;;  %v1204_v26 = vmul.f32 %v1192_v49, %v1174_v44  ;;  %v1218_v53 = vpop.permute.xlu1 %1217  ;;  %1341 = vmatprep.subr.bf16.mxu0 %v1206_v36 }
 0x2b9   :  { %v1231_v12 = vsel %vm536_vm8, %v1218_v53, %v2097_v32  ;;  %v1233_v29 = vsel %vm536_vm8, %v2093_v30, %v1218_v53  ;;  %1342 = vmatpush1.bf16.msra.mxu0 %v1205_v41 }
 0x2ba   :  { %v1207_v27 = vpack.c.bf16 %v1203_v60, %v1199_v17  ;;  %v1220_v8 = vpop.permute.xlu0 %1219  ;;  %v1208_v21 = vpack.c.bf16 %v1204_v26, %v1200_v15  ;;  %v1259_v56 = vmul.f32 %v1242_v48, %v1233_v29  ;;  %v1260_v46 = vmul.f32 %v1246_v28, %v1231_v12 }
 0x2bb   :  { %v1232_v11 = vsel %vm536_vm8, %v1220_v8, %v2388_v42  ;;  %v1234_v35 = vsel %vm536_vm8, %v2389_v43, %v1220_v8 }
 0x2bc   :  { %v1263_v47 = vmul.f32 %v1242_v48, %v1234_v35  ;;  %v1264_v2 = vmul.f32 %v1246_v28, %v1232_v11  ;;  %1382 = vmatprep.subr.bf16.mxu1 %v1208_v21  ;;  %v1226_v1 = vpop.permute.xlu1 %1225 }
 0x2bd   :  { %v1229_v52 = vsel %vm536_vm8, %v2097_v32, %v1226_v1  ;;  %v1235_v57 = vsel %vm536_vm8, %v1226_v1, %v2093_v30  ;;  %1383 = vmatpush1.bf16.msra.mxu1 %v1207_v27 }
 0x2be   :  { %v1267_v13 = vpack.c.bf16 %v1263_v47, %v1259_v56  ;;  %v1228_v5 = vpop.permute.xlu0 %1227  ;;  %v1268_v20 = vpack.c.bf16 %v1264_v2, %v1260_v46  ;;  %v1261_v32 = vmul.f32 %v1250_v3, %v1229_v52  ;;  %v1262_v51 = vmul.f32 %v1254_v62, %v1235_v57 }
 0x2bf   :  { %v1230_v23 = vsel %vm536_vm8, %v2388_v42, %v1228_v5  ;;  %v1236_v37 = vsel %vm536_vm8, %v1228_v5, %v2389_v43 }
 0x2c0   :  { %v1265_v22 = vmul.f32 %v1250_v3, %v1230_v23  ;;  %v1266_v63 = vmul.f32 %v1254_v62, %v1236_v37  ;;  %1343 = vmatprep.subr.bf16.mxu0 %v1268_v20 }
 0x2c1   :  { %1344 = vmatpush1.bf16.msra.mxu0 %v1267_v13 }
 0x2c2   :  { %v1269_v30 = vpack.c.bf16 %v1265_v22, %v1261_v32  ;;  %v1270_v4 = vpack.c.bf16 %v1266_v63, %v1262_v51 }
 0x2c4   :  { %1360 = vmatmul.mubr.bf16.vlgmr.msra.gmra.mrb[4].mxu0 %v1441_v7  ;;  %1384 = vmatprep.subr.bf16.mxu1 %v1270_v4 }
 0x2c5   :  { %1385 = vmatpush1.bf16.msra.mxu1 %v1269_v30 }
 0x2c8   :  { %1401 = vmatmul.mubr.bf16.vlgmr.msra.gmra.mrb[4].mxu1 %v1441_v7 }
 0x2cd   :  { %v1316_v6 = vpop.permute.xlu1 %1315 }
 0x397   :  { %v1361_v18 = vpop.f32.mrb[4].mxu0 }
 0x398   :  { %v1362_v61 = vadd.f32 %v1361_v18, %v1316_v6  ;;  %v1363_v10 = vpop.f32.mrb[5].mxu0 }
 0x399   :  { %v1364_v31 = vadd.f32 %v1363_v10, %v1316_v6  ;;  %v1365_v24 = vpop.f32.mrb[6].mxu0 }
 0x39a   :  { %v1409_v19 = vmax.f32 %v1362_v61, 0.0  ;;  %v1366_v58 = vpop.f32.mrb[7].mxu0 }
 0x39b   :  { %v1410_v54 = vmax.f32 %v1364_v31, 0.0  ;;  %v1402_v45 = vpop.f32.mrb[4].mxu1 }
 0x39c   :  { %1413 = vst [vmem:[%s2379_s6] sm:$0xff] %v1409_v19  ;;  %v1403_v34 = vadd.f32 %v1402_v45, %v1316_v6  ;;  %v1404_v50 = vpop.f32.mrb[5].mxu1 }
 0x39d   :  { %1414 = vst [vmem:[%s2379_s6 + $0x8] sm:$0xff] %v1410_v54  ;;  %v1405_v49 = vadd.f32 %v1404_v50, %v1316_v6  ;;  %v1406_v0 = vpop.f32.mrb[6].mxu1 }
 0x39e   :  { %v1411_v59 = vmax.f32 %v1403_v34, 0.0  ;;  %v1407_v40 = vpop.f32.mrb[7].mxu1 }
 0x39f   :  { %v1412_v33 = vmax.f32 %v1405_v49, 0.0 }
 0x3a0   :  { %1415 = vst [vmem:[%s2379_s6 + $0x10] sm:$0xff] %v1411_v59 }
 0x3a1   :  { %1416 = vst [vmem:[%s2379_s6 + $0x18] sm:$0xff] %v1412_v33 }

</bundles_post_ra>
